<compile_context>
chip_gen: v5e
topology: v5e:2x2
jax: 0.10.0
libtpu: 0.0.40
codegen_flags: <defaults>
</compile_context>

<pallas_src>
import math

import jax
import jax.numpy as jnp
from jax.experimental import pallas as pl
from jax.experimental.pallas import tpu as pltpu

# ----------------------------- config ---------------------------------------
BATCH = 2
CHANNELS = 3
IMG = 32
PATCH = 16                      # kernel = stride = 16 conv_proj
D = 128                         # hidden / latent dim (768 in real ViT-B/16)
HEADS = 4
HEAD_DIM = D // HEADS
MLP = 256
LAYERS = 2
NUM_CLASSES = 2                 # nn.Linear(in_features=768, out_features=2)
LN_EPS = 1e-6                   # torchvision ViT LayerNorm eps
NP_PATCH = (IMG // PATCH) ** 2  # patches per image
SEQ = NP_PATCH + 1              # patches + class token (= 5)
S_PAD = 8                       # sequence padded to sublane multiple
PATCH_DIM = CHANNELS * PATCH * PATCH
ATT_SCALE = 1.0 / math.sqrt(HEAD_DIM)   # folded into wqkv Q columns at init
NEG_INF = -1e9


# ----------------------------- in-kernel helpers -----------------------------
def _layer_norm(x, g, b):
    mu = jnp.mean(x, axis=-1, keepdims=True)
    xc = x - mu
    var = jnp.mean(xc * xc, axis=-1, keepdims=True)
    inv = jax.lax.rsqrt(var + LN_EPS)
    return xc * inv * g + b


def _gelu(x):
    # TODO(synk): torchvision ViT uses exact (erf) GELU; tanh approximation is
    # kept here for robust Mosaic lowering (max abs diff ~1e-3).
    c = math.sqrt(2.0 / math.pi)
    return 0.5 * x * (1.0 + jnp.tanh(c * (x + 0.044715 * x * x * x)))


def _attn_mask(m_tok, nb):
    # Built in-kernel from iota compares (no (M,M) f32 input / DMA).
    # Interleaved token layout: row = s * nb + b  ->  image = row % nb,
    # seq position = row // nb.  0 where (same image) AND (key row is a real
    # token); -1e9 elsewhere (also masks the padded key rows 5..7).
    row = jax.lax.broadcasted_iota(jnp.int32, (m_tok, m_tok), 0)
    col = jax.lax.broadcasted_iota(jnp.int32, (m_tok, m_tok), 1)
    same_img = (row % nb) == (col % nb)
    real_key = col < SEQ * nb               # == (col // nb) < SEQ
    return jnp.where(same_img & real_key, 0.0, NEG_INF).astype(jnp.float32)


# ----------------------------- fused ViT kernel ------------------------------
def _vit_fused_kernel(patches_ref, wp_ref, tmpl_ref,
                      ln1g_ref, ln1b_ref, wqkv_ref, bqkv_ref, wo_ref, bo_ref,
                      ln2g_ref, ln2b_ref, w1_ref, b1_ref, w2_ref, b2_ref,
                      lnfg_ref, lnfb_ref, out_ref, tok_ref):
    layer = pl.program_id(0)
    m_tok = tok_ref.shape[0]
    nb = out_ref.shape[0]

    # ---- layer 0 only: patch projection + token-slab assembly --------------
    # patches rows are pre-padded/interleaved on the host so the row layout is
    # [cls_b0, cls_b1, patch1_b0, patch1_b1, ..., pad...]; tmpl already holds
    # cls+pos / pos+b_patch rows, so a single full-tile add builds the slab.
    @pl.when(layer == 0)
    def _init():
        pe = jnp.dot(patches_ref[...], wp_ref[...],       # patches are bf16
                     preferred_element_type=jnp.float32)  # (M, D) f32
        tok_ref[...] = tmpl_ref[...] + pe

    x = tok_ref[...]                                      # (M, D) f32
    mask = _attn_mask(m_tok, nb)                          # (M, M) f32

    # ---- pre-norm multi-head self-attention ---------------------------------
    h = _layer_norm(x, ln1g_ref[0], ln1b_ref[0])
    qkv = jnp.dot(h.astype(jnp.bfloat16), wqkv_ref[0],
                  preferred_element_type=jnp.float32) + bqkv_ref[0]   # (M, 3D)
    qkv_b = qkv.astype(jnp.bfloat16)                      # MXU operands in bf16
    q_b = qkv_b[:, 0:D]                                   # Q pre-scaled at init
    v_b = qkv_b[:, 2 * D:3 * D]
    # One K transpose per layer (instead of an implicit XLU transpose per head
    # from an A @ B^T dot_general); per-head kT slices are cheap sublane slices.
    kT = jnp.transpose(qkv[:, D:2 * D]).astype(jnp.bfloat16)   # (D, M) bf16
    wo = wo_ref[0]                                        # (D, D) bf16

    attn = jnp.zeros(x.shape, jnp.float32)
    for hh in range(HEADS):
        sl = slice(hh * HEAD_DIM, (hh + 1) * HEAD_DIM)
        s = jnp.dot(q_b[:, sl], kT[sl, :],
                    preferred_element_type=jnp.float32) + mask     # (M, M)
        s = s - jnp.max(s, axis=-1, keepdims=True)
        p = jnp.exp(s)
        p = p * pl.reciprocal(jnp.sum(p, axis=-1, keepdims=True), approx=True)
        pv = jnp.dot(p.astype(jnp.bfloat16), v_b[:, sl],
                     preferred_element_type=jnp.float32)  # (M, HEAD_DIM)
        # accumulate head_h @ wo[h] -> no lane concatenate, lane-dense output
        attn = attn + jnp.dot(pv.astype(jnp.bfloat16), wo[sl, :],
                              preferred_element_type=jnp.float32)
    x = x + attn + bo_ref[0]                              # residual 1

    # ---- pre-norm MLP --------------------------------------------------------
    h2 = _layer_norm(x, ln2g_ref[0], ln2b_ref[0])
    m = jnp.dot(h2.astype(jnp.bfloat16), w1_ref[0],
                preferred_element_type=jnp.float32) + b1_ref[0]
    m = _gelu(m)
    m = jnp.dot(m.astype(jnp.bfloat16), w2_ref[0],
                preferred_element_type=jnp.float32) + b2_ref[0]
    x = x + m                                             # residual 2
    tok_ref[...] = x

    # ---- last layer only: final LayerNorm on the CLS rows -------------------
    @pl.when(layer == LAYERS - 1)
    def _final():
        # Interleaved layout puts all CLS rows at the top of the slab:
        # one contiguous slice, one vectorized LN, one store.
        cls_rows = x[0:nb, :]                             # (nb, D)
        out_ref[...] = _layer_norm(cls_rows, lnfg_ref[...], lnfb_ref[...])


def vit_fused(patches, tmpl, p):
    m_tok, _ = tmpl.shape
    nb = m_tok // S_PAD

    def full(arr):
        nd = arr.ndim
        return pl.BlockSpec(arr.shape, lambda l, _n=nd: (0,) * _n)

    def per_layer(arr):
        nd = arr.ndim
        return pl.BlockSpec((1,) + arr.shape[1:],
                            lambda l, _n=nd: (l,) + (0,) * (_n - 1))

    return pl.pallas_call(
        _vit_fused_kernel,
        out_shape=jax.ShapeDtypeStruct((nb, D), jnp.float32),
        grid=(LAYERS,),
        in_specs=[
            full(patches), full(p["w_patch"]), full(tmpl),
            per_layer(p["ln1_g"]), per_layer(p["ln1_b"]),
            per_layer(p["wqkv"]), per_layer(p["bqkv"]),
            per_layer(p["wo"]), per_layer(p["bo"]),
            per_layer(p["ln2_g"]), per_layer(p["ln2_b"]),
            per_layer(p["w1"]), per_layer(p["b1"]),
            per_layer(p["w2"]), per_layer(p["b2"]),
            full(p["ln_final_g"]), full(p["ln_final_b"]),
        ],
        out_specs=pl.BlockSpec((nb, D), lambda l: (0, 0)),
        scratch_shapes=[pltpu.VMEM((m_tok, D), jnp.float32)],
        compiler_params=pltpu.CompilerParams(
            dimension_semantics=("arbitrary",)),     # layer axis carries state
    )(patches, p["w_patch"], tmpl,
      p["ln1_g"], p["ln1_b"], p["wqkv"], p["bqkv"], p["wo"], p["bo"],
      p["ln2_g"], p["ln2_b"], p["w1"], p["b1"], p["w2"], p["b2"],
      p["ln_final_g"], p["ln_final_b"])


# ----------------------------- parameters ------------------------------------
def init_params(key):
    # Deterministic synthetic weights (the real module loads pretrained ViT).
    # Matmul weights stored in bf16 (MXU operands); everything else f32.
    def dense_f32(k, fan_in, fan_out):
        return jax.random.normal(k, (fan_in, fan_out), jnp.float32) * 0.02

    keys = jax.random.split(key, 4 + 4 * LAYERS)
    params = {
        "w_patch": dense_f32(keys[0], PATCH_DIM, D).astype(jnp.bfloat16),
        "b_patch": jnp.zeros((1, D), jnp.float32),
        "class_token": jax.random.normal(keys[1], (1, 1, D), jnp.float32) * 0.02,
        "pos_embedding": jax.random.normal(keys[2], (1, SEQ, D), jnp.float32) * 0.02,
        "ln_final_g": jnp.ones((1, D), jnp.float32),
        "ln_final_b": jnp.zeros((1, D), jnp.float32),
        "w_head": jax.random.normal(keys[3], (D, NUM_CLASSES), jnp.float32) * 0.02,
        "b_head": jnp.zeros((1, NUM_CLASSES), jnp.float32),
    }
    wqkv, wo, w1, w2 = [], [], [], []
    for l in range(LAYERS):
        k0, k1, k2, k3 = keys[4 + 4 * l: 8 + 4 * l]
        w_qkv = dense_f32(k0, D, 3 * D)
        # Fold the 1/sqrt(HEAD_DIM) softmax scale into the Q columns (one-time,
        # host-side) so the kernel never multiplies scores by `scale`.
        w_qkv = w_qkv.at[:, :D].multiply(ATT_SCALE)
        wqkv.append(w_qkv.astype(jnp.bfloat16))
        wo.append(dense_f32(k1, D, D).astype(jnp.bfloat16))
        w1.append(dense_f32(k2, D, MLP).astype(jnp.bfloat16))
        w2.append(dense_f32(k3, MLP, D).astype(jnp.bfloat16))
    # Q bias must be pre-scaled the same way (zeros here, kept for generality).
    bqkv = jnp.zeros((LAYERS, 1, 3 * D), jnp.float32).at[:, :, :D].multiply(ATT_SCALE)
    params.update({
        "ln1_g": jnp.ones((LAYERS, 1, D), jnp.float32),
        "ln1_b": jnp.zeros((LAYERS, 1, D), jnp.float32),
        "wqkv": jnp.stack(wqkv),
        "bqkv": bqkv,
        "wo": jnp.stack(wo),
        "bo": jnp.zeros((LAYERS, 1, D), jnp.float32),
        "ln2_g": jnp.ones((LAYERS, 1, D), jnp.float32),
        "ln2_b": jnp.zeros((LAYERS, 1, D), jnp.float32),
        "w1": jnp.stack(w1),
        "b1": jnp.zeros((LAYERS, 1, MLP), jnp.float32),
        "w2": jnp.stack(w2),
        "b2": jnp.zeros((LAYERS, 1, D), jnp.float32),
    })
    return params


# ----------------------------- glue (plain JAX) -------------------------------
def embed(params, img):
    # img: (B, C, H, W) NCHW, like the PyTorch module (unsqueeze if 3-D).
    if img.ndim == 3:
        img = img[None]
    nb = img.shape[0]
    hp = IMG // PATCH

    # conv_proj with kernel=stride=16  ==  per-patch flatten (C, kh, kw order)
    # followed by a matmul, done inside the fused kernel.  Rows use the
    # interleaved layout (row = s * nb + b) so CLS rows are rows [0, nb).
    pat = img.reshape(nb, CHANNELS, hp, PATCH, hp, PATCH)
    pat = pat.transpose(0, 2, 4, 1, 3, 5).reshape(nb, NP_PATCH, PATCH_DIM)
    patches_full = jnp.zeros((S_PAD, nb, PATCH_DIM), jnp.float32)
    patches_full = patches_full.at[1:SEQ].set(pat.transpose(1, 0, 2))
    patches_padded = patches_full.reshape(S_PAD * nb, PATCH_DIM).astype(jnp.bfloat16)

    # Token template rows per seq position: [cls+pos0, pos1..4 + b_patch, 0,0,0]
    # repeated per image in interleaved order.
    pos = params["pos_embedding"][0]                       # (SEQ, D)
    cls = params["class_token"][0]                         # (1, D)
    rows = jnp.concatenate(
        [cls + pos[0:1],
         pos[1:SEQ] + params["b_patch"],
         jnp.zeros((S_PAD - SEQ, D), jnp.float32)], axis=0)   # (S_PAD, D)
    tmpl = jnp.repeat(rows, nb, axis=0)                    # (nb*S_PAD, D)

    return vit_fused(patches_padded, tmpl, params)         # (nb, D) CLS feats


def forward(params, img, head=False):
    embeds = embed(params, img)
    if head:
        # NUM_CLASSES=2 output: a Pallas launch with a 2-lane out_spec would
        # cost more (masked vst + launch) than the op; plain XLA per review.
        return jnp.dot(embeds, params["w_head"]) + params["b_head"]
    return embeds


# TODO(synk): z_epoch / memory / generate_global_samples are stateful training
# bookkeeping (torch.cat accumulation + Normal sampling), not part of the
# forward hot path, so they are not implemented as kernels.


if __name__ == "__main__":
    key = jax.random.PRNGKey(0)
    pkey, xkey = jax.random.split(key)
    params = init_params(pkey)
    img = jax.random.normal(xkey, (BATCH, CHANNELS, IMG, IMG), jnp.float32)

    embeds = forward(params, img, head=False)     # (B, D) CLS features
    logits = forward(params, img, head=True)      # (B, NUM_CLASSES)
    jax.block_until_ready((embeds, logits))

    assert embeds.shape == (BATCH, D)
    assert logits.shape == (BATCH, NUM_CLASSES)
    assert bool(jnp.all(jnp.isfinite(embeds))) and bool(jnp.all(jnp.isfinite(logits)))
    print("KERNEL_OK")
</pallas_src>

<mosaic_0001>
module attributes {stable_mosaic.version = 11 : i64} {
  func.func @_vit_fused_kernel(%arg0: i32, %arg1: memref<16x768xbf16, #tpu.memory_space<vmem>>, %arg2: memref<768x128xbf16, #tpu.memory_space<vmem>>, %arg3: memref<16x128xf32, #tpu.memory_space<vmem>>, %arg4: memref<1x1x128xf32, #tpu.memory_space<vmem>>, %arg5: memref<1x1x128xf32, #tpu.memory_space<vmem>>, %arg6: memref<1x128x384xbf16, #tpu.memory_space<vmem>>, %arg7: memref<1x1x384xf32, #tpu.memory_space<vmem>>, %arg8: memref<1x128x128xbf16, #tpu.memory_space<vmem>>, %arg9: memref<1x1x128xf32, #tpu.memory_space<vmem>>, %arg10: memref<1x1x128xf32, #tpu.memory_space<vmem>>, %arg11: memref<1x1x128xf32, #tpu.memory_space<vmem>>, %arg12: memref<1x128x256xbf16, #tpu.memory_space<vmem>>, %arg13: memref<1x1x256xf32, #tpu.memory_space<vmem>>, %arg14: memref<1x256x128xbf16, #tpu.memory_space<vmem>>, %arg15: memref<1x1x128xf32, #tpu.memory_space<vmem>>, %arg16: memref<1x128xf32, #tpu.memory_space<vmem>>, %arg17: memref<1x128xf32, #tpu.memory_space<vmem>>, %arg18: memref<2x128xf32, #tpu.memory_space<vmem>>, %arg19: memref<16x128xf32, #tpu.memory_space<vmem>>) attributes {dimension_semantics = [#tpu.dimension_semantics<arbitrary>], iteration_bounds = array<i64: 2>, scalar_prefetch = 0 : i64, scratch_operands = 1 : i64, tpu.core_type = #tpu.core_type<tc>, window_params = [{pipeline_mode = #tpu.pipeline_mode<synchronous>, transform_indices = @transform_0, window_bounds = array<i64: 16, 768>}, {pipeline_mode = #tpu.pipeline_mode<synchronous>, transform_indices = @transform_1, window_bounds = array<i64: 768, 128>}, {pipeline_mode = #tpu.pipeline_mode<synchronous>, transform_indices = @transform_2, window_bounds = array<i64: 16, 128>}, {transform_indices = @transform_3, window_bounds = array<i64: 1, 1, 128>}, {transform_indices = @transform_4, window_bounds = array<i64: 1, 1, 128>}, {transform_indices = @transform_5, window_bounds = array<i64: 1, 128, 384>}, {transform_indices = @transform_6, window_bounds = array<i64: 1, 1, 384>}, {transform_indices = @transform_7, window_bounds = array<i64: 1, 128, 128>}, {transform_indices = @transform_8, window_bounds = array<i64: 1, 1, 128>}, {transform_indices = @transform_9, window_bounds = array<i64: 1, 1, 128>}, {transform_indices = @transform_10, window_bounds = array<i64: 1, 1, 128>}, {transform_indices = @transform_11, window_bounds = array<i64: 1, 128, 256>}, {transform_indices = @transform_12, window_bounds = array<i64: 1, 1, 256>}, {transform_indices = @transform_13, window_bounds = array<i64: 1, 256, 128>}, {transform_indices = @transform_14, window_bounds = array<i64: 1, 1, 128>}, {pipeline_mode = #tpu.pipeline_mode<synchronous>, transform_indices = @transform_15, window_bounds = array<i64: 1, 128>}, {pipeline_mode = #tpu.pipeline_mode<synchronous>, transform_indices = @transform_16, window_bounds = array<i64: 1, 128>}, {pipeline_mode = #tpu.pipeline_mode<synchronous>, transform_indices = @transform_17, window_bounds = array<i64: 2, 128>}]} {
    %c0_i32 = arith.constant 0 : i32
    %0 = arith.cmpi eq, %arg0, %c0_i32 : i32
    %1 = arith.extui %0 : i1 to i32
    %c0_i32_0 = arith.constant 0 : i32
    %2 = arith.cmpi ne, %1, %c0_i32_0 : i32
    scf.if %2 {
      %c0_91 = arith.constant 0 : index
      %c0_92 = arith.constant 0 : index
      %233 = vector.load %arg1[%c0_91, %c0_92] : memref<16x768xbf16, #tpu.memory_space<vmem>>, vector<16x768xbf16>
      %c0_93 = arith.constant 0 : index
      %c0_94 = arith.constant 0 : index
      %234 = vector.load %arg2[%c0_93, %c0_94] : memref<768x128xbf16, #tpu.memory_space<vmem>>, vector<768x128xbf16>
      %cst_95 = arith.constant dense<0.000000e+00> : vector<16x128xf32>
      %235 = tpu.matmul %233, %234, %cst_95 {dimension_numbers = #tpu.dot_dimension_numbers<[1], [0], [0], [1], [0, 0, 1, 1], [], []>} : vector<16x768xbf16>, vector<768x128xbf16>, vector<16x128xf32> -> vector<16x128xf32>
      %c0_96 = arith.constant 0 : index
      %c0_97 = arith.constant 0 : index
      %236 = vector.load %arg3[%c0_96, %c0_97] : memref<16x128xf32, #tpu.memory_space<vmem>>, vector<16x128xf32>
      %237 = arith.addf %236, %235 : vector<16x128xf32>
      %c0_98 = arith.constant 0 : index
      %c0_99 = arith.constant 0 : index
      %238 = vector.load %arg19[%c0_98, %c0_99] : memref<16x128xf32, #tpu.memory_space<vmem>>, vector<16x128xf32>
      tpu.vector_store %arg19[%c0_98, %c0_99], %237 {strides = array<i32>} : memref<16x128xf32, #tpu.memory_space<vmem>>, vector<16x128xf32>,
    } else {
    }
    %c0 = arith.constant 0 : index
    %c0_1 = arith.constant 0 : index
    %3 = vector.load %arg19[%c0, %c0_1] : memref<16x128xf32, #tpu.memory_space<vmem>>, vector<16x128xf32>
    %4 = tpu.iota {dimensions = array<i32: 0>} : vector<16x16xi32>
    %5 = tpu.iota {dimensions = array<i32: 1>} : vector<16x16xi32>
    %c2_i32 = arith.constant 2 : i32
    %c0_i32_2 = arith.constant 0 : i32
    %6 = arith.cmpi eq, %c2_i32, %c0_i32_2 : i32
    %c1_i32 = arith.constant 1 : i32
    %7 = arith.select %6, %c1_i32, %c2_i32 : i32
    %8 = vector.broadcast %7 : i32 to vector<16x16xi32>
    %9 = arith.remsi %4, %8 : vector<16x16xi32>
    %c0_i32_3 = arith.constant 0 : i32
    %10 = vector.broadcast %c0_i32_3 : i32 to vector<16x16xi32>
    %11 = arith.cmpi ne, %9, %10 : vector<16x16xi32>
    %c0_i32_4 = arith.constant 0 : i32
    %12 = vector.broadcast %c0_i32_4 : i32 to vector<16x16xi32>
    %13 = arith.cmpi slt, %9, %12 : vector<16x16xi32>
    %c0_i32_5 = arith.constant 0 : i32
    %14 = arith.cmpi slt, %7, %c0_i32_5 : i32
    %15 = vector.broadcast %14 : i1 to vector<16x16xi1>
    %16 = vector.broadcast %15 : vector<16x16xi1> to vector<16x16xi1>
    %17 = arith.xori %13, %16 : vector<16x16xi1>
    %18 = arith.andi %17, %11 : vector<16x16xi1>
    %19 = vector.broadcast %7 : i32 to vector<16x16xi32>
    %20 = arith.addi %9, %19 : vector<16x16xi32>
    %21 = arith.select %18, %20, %9 : vector<16x16xi1>, vector<16x16xi32>
    %c2_i32_6 = arith.constant 2 : i32
    %c0_i32_7 = arith.constant 0 : i32
    %22 = arith.cmpi eq, %c2_i32_6, %c0_i32_7 : i32
    %c1_i32_8 = arith.constant 1 : i32
    %23 = arith.select %22, %c1_i32_8, %c2_i32_6 : i32
    %24 = vector.broadcast %23 : i32 to vector<16x16xi32>
    %25 = arith.remsi %5, %24 : vector<16x16xi32>
    %c0_i32_9 = arith.constant 0 : i32
    %26 = vector.broadcast %c0_i32_9 : i32 to vector<16x16xi32>
    %27 = arith.cmpi ne, %25, %26 : vector<16x16xi32>
    %c0_i32_10 = arith.constant 0 : i32
    %28 = vector.broadcast %c0_i32_10 : i32 to vector<16x16xi32>
    %29 = arith.cmpi slt, %25, %28 : vector<16x16xi32>
    %c0_i32_11 = arith.constant 0 : i32
    %30 = arith.cmpi slt, %23, %c0_i32_11 : i32
    %31 = vector.broadcast %30 : i1 to vector<16x16xi1>
    %32 = vector.broadcast %31 : vector<16x16xi1> to vector<16x16xi1>
    %33 = arith.xori %29, %32 : vector<16x16xi1>
    %34 = arith.andi %33, %27 : vector<16x16xi1>
    %35 = vector.broadcast %23 : i32 to vector<16x16xi32>
    %36 = arith.addi %25, %35 : vector<16x16xi32>
    %37 = arith.select %34, %36, %25 : vector<16x16xi1>, vector<16x16xi32>
    %38 = arith.cmpi eq, %21, %37 : vector<16x16xi32>
    %c10_i32 = arith.constant 10 : i32
    %39 = vector.broadcast %c10_i32 : i32 to vector<16x16xi32>
    %40 = arith.cmpi slt, %5, %39 : vector<16x16xi32>
    %41 = arith.andi %38, %40 : vector<16x16xi1>
    %cst = arith.constant 0.000000e+00 : f32
    %cst_12 = arith.constant -1.000000e+09 : f32
    %42 = vector.broadcast %cst : f32 to vector<16x16xf32>
    %43 = vector.broadcast %cst_12 : f32 to vector<16x16xf32>
    %44 = arith.select %41, %42, %43 : vector<16x16xi1>, vector<16x16xf32>
    %c0_13 = arith.constant 0 : index
    %c0_14 = arith.constant 0 : index
    %c0_15 = arith.constant 0 : index
    %45 = vector.load %arg4[%c0_13, %c0_14, %c0_15] : memref<1x1x128xf32, #tpu.memory_space<vmem>>, vector<1x1x128xf32>
    %46 = vector.shape_cast %45 : vector<1x1x128xf32> to vector<1x128xf32>
    %c0_16 = arith.constant 0 : index
    %c0_17 = arith.constant 0 : index
    %c0_18 = arith.constant 0 : index
    %47 = vector.load %arg5[%c0_16, %c0_17, %c0_18] : memref<1x1x128xf32, #tpu.memory_space<vmem>>, vector<1x1x128xf32>
    %48 = vector.shape_cast %47 : vector<1x1x128xf32> to vector<1x128xf32>
    %cst_19 = arith.constant dense<0.000000e+00> : vector<16xf32>
    %49 = vector.multi_reduction <add>, %3, %cst_19 [1] : vector<16x128xf32> to vector<16xf32>
    %50 = vector.shape_cast %49 : vector<16xf32> to vector<16x1xf32>
    %cst_20 = arith.constant 1.280000e+02 : f32
    %51 = vector.broadcast %cst_20 : f32 to vector<16x1xf32>
    %52 = arith.divf %50, %51 : vector<16x1xf32>
    %53 = vector.broadcast %52 : vector<16x1xf32> to vector<16x128xf32>
    %54 = arith.subf %3, %53 : vector<16x128xf32>
    %55 = arith.mulf %54, %54 : vector<16x128xf32>
    %cst_21 = arith.constant dense<0.000000e+00> : vector<16xf32>
    %56 = vector.multi_reduction <add>, %55, %cst_21 [1] : vector<16x128xf32> to vector<16xf32>
    %57 = vector.shape_cast %56 : vector<16xf32> to vector<16x1xf32>
    %cst_22 = arith.constant 1.280000e+02 : f32
    %58 = vector.broadcast %cst_22 : f32 to vector<16x1xf32>
    %59 = arith.divf %57, %58 : vector<16x1xf32>
    %cst_23 = arith.constant 9.99999997E-7 : f32
    %60 = vector.broadcast %cst_23 : f32 to vector<16x1xf32>
    %61 = arith.addf %59, %60 : vector<16x1xf32>
    %62 = math.rsqrt %61 : vector<16x1xf32>
    %63 = vector.broadcast %62 : vector<16x1xf32> to vector<16x128xf32>
    %64 = arith.mulf %54, %63 : vector<16x128xf32>
    %65 = vector.broadcast %46 : vector<1x128xf32> to vector<16x128xf32>
    %66 = arith.mulf %64, %65 : vector<16x128xf32>
    %67 = vector.broadcast %48 : vector<1x128xf32> to vector<16x128xf32>
    %68 = arith.addf %66, %67 : vector<16x128xf32>
    %69 = arith.truncf %68 : vector<16x128xf32> to vector<16x128xbf16>
    %c0_24 = arith.constant 0 : index
    %c0_25 = arith.constant 0 : index
    %c0_26 = arith.constant 0 : index
    %70 = vector.load %arg6[%c0_24, %c0_25, %c0_26] : memref<1x128x384xbf16, #tpu.memory_space<vmem>>, vector<1x128x384xbf16>
    %71 = vector.shape_cast %70 : vector<1x128x384xbf16> to vector<128x384xbf16>
    %cst_27 = arith.constant dense<0.000000e+00> : vector<16x384xf32>
    %72 = tpu.matmul %69, %71, %cst_27 {dimension_numbers = #tpu.dot_dimension_numbers<[1], [0], [0], [1], [0, 0, 1, 1], [], []>} : vector<16x128xbf16>, vector<128x384xbf16>, vector<16x384xf32> -> vector<16x384xf32>
    %c0_28 = arith.constant 0 : index
    %c0_29 = arith.constant 0 : index
    %c0_30 = arith.constant 0 : index
    %73 = vector.load %arg7[%c0_28, %c0_29, %c0_30] : memref<1x1x384xf32, #tpu.memory_space<vmem>>, vector<1x1x384xf32>
    %74 = vector.shape_cast %73 : vector<1x1x384xf32> to vector<1x384xf32>
    %75 = vector.broadcast %74 : vector<1x384xf32> to vector<16x384xf32>
    %76 = arith.addf %72, %75 : vector<16x384xf32>
    %77 = arith.truncf %76 : vector<16x384xf32> to vector<16x384xbf16>
    %78 = vector.extract_strided_slice %77 {offsets = [0, 0], sizes = [16, 128], strides = [1, 1]} : vector<16x384xbf16> to vector<16x128xbf16>
    %79 = vector.extract_strided_slice %77 {offsets = [0, 256], sizes = [16, 128], strides = [1, 1]} : vector<16x384xbf16> to vector<16x128xbf16>
    %80 = vector.extract_strided_slice %76 {offsets = [0, 128], sizes = [16, 128], strides = [1, 1]} : vector<16x384xf32> to vector<16x128xf32>
    %81 = tpu.transpose %80, [1, 0] : vector<16x128xf32> -> vector<128x16xf32>
    %82 = arith.truncf %81 : vector<128x16xf32> to vector<128x16xbf16>
    %c0_31 = arith.constant 0 : index
    %c0_32 = arith.constant 0 : index
    %c0_33 = arith.constant 0 : index
    %83 = vector.load %arg8[%c0_31, %c0_32, %c0_33] : memref<1x128x128xbf16, #tpu.memory_space<vmem>>, vector<1x128x128xbf16>
    %84 = vector.shape_cast %83 : vector<1x128x128xbf16> to vector<128x128xbf16>
    %cst_34 = arith.constant 0.000000e+00 : f32
    %85 = vector.broadcast %cst_34 : f32 to vector<16x128xf32>
    %86 = vector.extract_strided_slice %78 {offsets = [0, 0], sizes = [16, 32], strides = [1, 1]} : vector<16x128xbf16> to vector<16x32xbf16>
    %87 = vector.extract_strided_slice %82 {offsets = [0, 0], sizes = [32, 16], strides = [1, 1]} : vector<128x16xbf16> to vector<32x16xbf16>
    %cst_35 = arith.constant dense<0.000000e+00> : vector<16x16xf32>
    %88 = tpu.matmul %86, %87, %cst_35 {dimension_numbers = #tpu.dot_dimension_numbers<[1], [0], [0], [1], [0, 0, 1, 1], [], []>} : vector<16x32xbf16>, vector<32x16xbf16>, vector<16x16xf32> -> vector<16x16xf32>
    %89 = arith.addf %88, %44 : vector<16x16xf32>
    %cst_36 = arith.constant dense<0xFF800000> : vector<16xf32>
    %90 = vector.multi_reduction <maximumf>, %89, %cst_36 [1] : vector<16x16xf32> to vector<16xf32>
    %91 = vector.shape_cast %90 : vector<16xf32> to vector<16x1xf32>
    %92 = vector.broadcast %91 : vector<16x1xf32> to vector<16x16xf32>
    %93 = arith.subf %89, %92 : vector<16x16xf32>
    %94 = math.exp %93 : vector<16x16xf32>
    %cst_37 = arith.constant dense<0.000000e+00> : vector<16xf32>
    %95 = vector.multi_reduction <add>, %94, %cst_37 [1] : vector<16x16xf32> to vector<16xf32>
    %96 = vector.shape_cast %95 : vector<16xf32> to vector<16x1xf32>
    %97 = tpu.reciprocal %96 {approx = true} : vector<16x1xf32> -> vector<16x1xf32>
    %98 = vector.broadcast %97 : vector<16x1xf32> to vector<16x16xf32>
    %99 = arith.mulf %94, %98 : vector<16x16xf32>
    %100 = arith.truncf %99 : vector<16x16xf32> to vector<16x16xbf16>
    %101 = vector.extract_strided_slice %79 {offsets = [0, 0], sizes = [16, 32], strides = [1, 1]} : vector<16x128xbf16> to vector<16x32xbf16>
    %cst_38 = arith.constant dense<0.000000e+00> : vector<16x32xf32>
    %102 = tpu.matmul %100, %101, %cst_38 {dimension_numbers = #tpu.dot_dimension_numbers<[1], [0], [0], [1], [0, 0, 1, 1], [], []>} : vector<16x16xbf16>, vector<16x32xbf16>, vector<16x32xf32> -> vector<16x32xf32>
    %103 = arith.truncf %102 : vector<16x32xf32> to vector<16x32xbf16>
    %104 = vector.extract_strided_slice %84 {offsets = [0, 0], sizes = [32, 128], strides = [1, 1]} : vector<128x128xbf16> to vector<32x128xbf16>
    %cst_39 = arith.constant dense<0.000000e+00> : vector<16x128xf32>
    %105 = tpu.matmul %103, %104, %cst_39 {dimension_numbers = #tpu.dot_dimension_numbers<[1], [0], [0], [1], [0, 0, 1, 1], [], []>} : vector<16x32xbf16>, vector<32x128xbf16>, vector<16x128xf32> -> vector<16x128xf32>
    %106 = arith.addf %85, %105 : vector<16x128xf32>
    %107 = vector.extract_strided_slice %78 {offsets = [0, 32], sizes = [16, 32], strides = [1, 1]} : vector<16x128xbf16> to vector<16x32xbf16>
    %108 = vector.extract_strided_slice %82 {offsets = [32, 0], sizes = [32, 16], strides = [1, 1]} : vector<128x16xbf16> to vector<32x16xbf16>
    %cst_40 = arith.constant dense<0.000000e+00> : vector<16x16xf32>
    %109 = tpu.matmul %107, %108, %cst_40 {dimension_numbers = #tpu.dot_dimension_numbers<[1], [0], [0], [1], [0, 0, 1, 1], [], []>} : vector<16x32xbf16>, vector<32x16xbf16>, vector<16x16xf32> -> vector<16x16xf32>
    %110 = arith.addf %109, %44 : vector<16x16xf32>
    %cst_41 = arith.constant dense<0xFF800000> : vector<16xf32>
    %111 = vector.multi_reduction <maximumf>, %110, %cst_41 [1] : vector<16x16xf32> to vector<16xf32>
    %112 = vector.shape_cast %111 : vector<16xf32> to vector<16x1xf32>
    %113 = vector.broadcast %112 : vector<16x1xf32> to vector<16x16xf32>
    %114 = arith.subf %110, %113 : vector<16x16xf32>
    %115 = math.exp %114 : vector<16x16xf32>
    %cst_42 = arith.constant dense<0.000000e+00> : vector<16xf32>
    %116 = vector.multi_reduction <add>, %115, %cst_42 [1] : vector<16x16xf32> to vector<16xf32>
    %117 = vector.shape_cast %116 : vector<16xf32> to vector<16x1xf32>
    %118 = tpu.reciprocal %117 {approx = true} : vector<16x1xf32> -> vector<16x1xf32>
    %119 = vector.broadcast %118 : vector<16x1xf32> to vector<16x16xf32>
    %120 = arith.mulf %115, %119 : vector<16x16xf32>
    %121 = arith.truncf %120 : vector<16x16xf32> to vector<16x16xbf16>
    %122 = vector.extract_strided_slice %79 {offsets = [0, 32], sizes = [16, 32], strides = [1, 1]} : vector<16x128xbf16> to vector<16x32xbf16>
    %cst_43 = arith.constant dense<0.000000e+00> : vector<16x32xf32>
    %123 = tpu.matmul %121, %122, %cst_43 {dimension_numbers = #tpu.dot_dimension_numbers<[1], [0], [0], [1], [0, 0, 1, 1], [], []>} : vector<16x16xbf16>, vector<16x32xbf16>, vector<16x32xf32> -> vector<16x32xf32>
    %124 = arith.truncf %123 : vector<16x32xf32> to vector<16x32xbf16>
    %125 = vector.extract_strided_slice %84 {offsets = [32, 0], sizes = [32, 128], strides = [1, 1]} : vector<128x128xbf16> to vector<32x128xbf16>
    %cst_44 = arith.constant dense<0.000000e+00> : vector<16x128xf32>
    %126 = tpu.matmul %124, %125, %cst_44 {dimension_numbers = #tpu.dot_dimension_numbers<[1], [0], [0], [1], [0, 0, 1, 1], [], []>} : vector<16x32xbf16>, vector<32x128xbf16>, vector<16x128xf32> -> vector<16x128xf32>
    %127 = arith.addf %106, %126 : vector<16x128xf32>
    %128 = vector.extract_strided_slice %78 {offsets = [0, 64], sizes = [16, 32], strides = [1, 1]} : vector<16x128xbf16> to vector<16x32xbf16>
    %129 = vector.extract_strided_slice %82 {offsets = [64, 0], sizes = [32, 16], strides = [1, 1]} : vector<128x16xbf16> to vector<32x16xbf16>
    %cst_45 = arith.constant dense<0.000000e+00> : vector<16x16xf32>
    %130 = tpu.matmul %128, %129, %cst_45 {dimension_numbers = #tpu.dot_dimension_numbers<[1], [0], [0], [1], [0, 0, 1, 1], [], []>} : vector<16x32xbf16>, vector<32x16xbf16>, vector<16x16xf32> -> vector<16x16xf32>
    %131 = arith.addf %130, %44 : vector<16x16xf32>
    %cst_46 = arith.constant dense<0xFF800000> : vector<16xf32>
    %132 = vector.multi_reduction <maximumf>, %131, %cst_46 [1] : vector<16x16xf32> to vector<16xf32>
    %133 = vector.shape_cast %132 : vector<16xf32> to vector<16x1xf32>
    %134 = vector.broadcast %133 : vector<16x1xf32> to vector<16x16xf32>
    %135 = arith.subf %131, %134 : vector<16x16xf32>
    %136 = math.exp %135 : vector<16x16xf32>
    %cst_47 = arith.constant dense<0.000000e+00> : vector<16xf32>
    %137 = vector.multi_reduction <add>, %136, %cst_47 [1] : vector<16x16xf32> to vector<16xf32>
    %138 = vector.shape_cast %137 : vector<16xf32> to vector<16x1xf32>
    %139 = tpu.reciprocal %138 {approx = true} : vector<16x1xf32> -> vector<16x1xf32>
    %140 = vector.broadcast %139 : vector<16x1xf32> to vector<16x16xf32>
    %141 = arith.mulf %136, %140 : vector<16x16xf32>
    %142 = arith.truncf %141 : vector<16x16xf32> to vector<16x16xbf16>
    %143 = vector.extract_strided_slice %79 {offsets = [0, 64], sizes = [16, 32], strides = [1, 1]} : vector<16x128xbf16> to vector<16x32xbf16>
    %cst_48 = arith.constant dense<0.000000e+00> : vector<16x32xf32>
    %144 = tpu.matmul %142, %143, %cst_48 {dimension_numbers = #tpu.dot_dimension_numbers<[1], [0], [0], [1], [0, 0, 1, 1], [], []>} : vector<16x16xbf16>, vector<16x32xbf16>, vector<16x32xf32> -> vector<16x32xf32>
    %145 = arith.truncf %144 : vector<16x32xf32> to vector<16x32xbf16>
    %146 = vector.extract_strided_slice %84 {offsets = [64, 0], sizes = [32, 128], strides = [1, 1]} : vector<128x128xbf16> to vector<32x128xbf16>
    %cst_49 = arith.constant dense<0.000000e+00> : vector<16x128xf32>
    %147 = tpu.matmul %145, %146, %cst_49 {dimension_numbers = #tpu.dot_dimension_numbers<[1], [0], [0], [1], [0, 0, 1, 1], [], []>} : vector<16x32xbf16>, vector<32x128xbf16>, vector<16x128xf32> -> vector<16x128xf32>
    %148 = arith.addf %127, %147 : vector<16x128xf32>
    %149 = vector.extract_strided_slice %78 {offsets = [0, 96], sizes = [16, 32], strides = [1, 1]} : vector<16x128xbf16> to vector<16x32xbf16>
    %150 = vector.extract_strided_slice %82 {offsets = [96, 0], sizes = [32, 16], strides = [1, 1]} : vector<128x16xbf16> to vector<32x16xbf16>
    %cst_50 = arith.constant dense<0.000000e+00> : vector<16x16xf32>
    %151 = tpu.matmul %149, %150, %cst_50 {dimension_numbers = #tpu.dot_dimension_numbers<[1], [0], [0], [1], [0, 0, 1, 1], [], []>} : vector<16x32xbf16>, vector<32x16xbf16>, vector<16x16xf32> -> vector<16x16xf32>
    %152 = arith.addf %151, %44 : vector<16x16xf32>
    %cst_51 = arith.constant dense<0xFF800000> : vector<16xf32>
    %153 = vector.multi_reduction <maximumf>, %152, %cst_51 [1] : vector<16x16xf32> to vector<16xf32>
    %154 = vector.shape_cast %153 : vector<16xf32> to vector<16x1xf32>
    %155 = vector.broadcast %154 : vector<16x1xf32> to vector<16x16xf32>
    %156 = arith.subf %152, %155 : vector<16x16xf32>
    %157 = math.exp %156 : vector<16x16xf32>
    %cst_52 = arith.constant dense<0.000000e+00> : vector<16xf32>
    %158 = vector.multi_reduction <add>, %157, %cst_52 [1] : vector<16x16xf32> to vector<16xf32>
    %159 = vector.shape_cast %158 : vector<16xf32> to vector<16x1xf32>
    %160 = tpu.reciprocal %159 {approx = true} : vector<16x1xf32> -> vector<16x1xf32>
    %161 = vector.broadcast %160 : vector<16x1xf32> to vector<16x16xf32>
    %162 = arith.mulf %157, %161 : vector<16x16xf32>
    %163 = arith.truncf %162 : vector<16x16xf32> to vector<16x16xbf16>
    %164 = vector.extract_strided_slice %79 {offsets = [0, 96], sizes = [16, 32], strides = [1, 1]} : vector<16x128xbf16> to vector<16x32xbf16>
    %cst_53 = arith.constant dense<0.000000e+00> : vector<16x32xf32>
    %165 = tpu.matmul %163, %164, %cst_53 {dimension_numbers = #tpu.dot_dimension_numbers<[1], [0], [0], [1], [0, 0, 1, 1], [], []>} : vector<16x16xbf16>, vector<16x32xbf16>, vector<16x32xf32> -> vector<16x32xf32>
    %166 = arith.truncf %165 : vector<16x32xf32> to vector<16x32xbf16>
    %167 = vector.extract_strided_slice %84 {offsets = [96, 0], sizes = [32, 128], strides = [1, 1]} : vector<128x128xbf16> to vector<32x128xbf16>
    %cst_54 = arith.constant dense<0.000000e+00> : vector<16x128xf32>
    %168 = tpu.matmul %166, %167, %cst_54 {dimension_numbers = #tpu.dot_dimension_numbers<[1], [0], [0], [1], [0, 0, 1, 1], [], []>} : vector<16x32xbf16>, vector<32x128xbf16>, vector<16x128xf32> -> vector<16x128xf32>
    %169 = arith.addf %148, %168 : vector<16x128xf32>
    %170 = arith.addf %3, %169 : vector<16x128xf32>
    %c0_55 = arith.constant 0 : index
    %c0_56 = arith.constant 0 : index
    %c0_57 = arith.constant 0 : index
    %171 = vector.load %arg9[%c0_55, %c0_56, %c0_57] : memref<1x1x128xf32, #tpu.memory_space<vmem>>, vector<1x1x128xf32>
    %172 = vector.shape_cast %171 : vector<1x1x128xf32> to vector<1x128xf32>
    %173 = vector.broadcast %172 : vector<1x128xf32> to vector<16x128xf32>
    %174 = arith.addf %170, %173 : vector<16x128xf32>
    %c0_58 = arith.constant 0 : index
    %c0_59 = arith.constant 0 : index
    %c0_60 = arith.constant 0 : index
    %175 = vector.load %arg10[%c0_58, %c0_59, %c0_60] : memref<1x1x128xf32, #tpu.memory_space<vmem>>, vector<1x1x128xf32>
    %176 = vector.shape_cast %175 : vector<1x1x128xf32> to vector<1x128xf32>
    %c0_61 = arith.constant 0 : index
    %c0_62 = arith.constant 0 : index
    %c0_63 = arith.constant 0 : index
    %177 = vector.load %arg11[%c0_61, %c0_62, %c0_63] : memref<1x1x128xf32, #tpu.memory_space<vmem>>, vector<1x1x128xf32>
    %178 = vector.shape_cast %177 : vector<1x1x128xf32> to vector<1x128xf32>
    %cst_64 = arith.constant dense<0.000000e+00> : vector<16xf32>
    %179 = vector.multi_reduction <add>, %174, %cst_64 [1] : vector<16x128xf32> to vector<16xf32>
    %180 = vector.shape_cast %179 : vector<16xf32> to vector<16x1xf32>
    %cst_65 = arith.constant 1.280000e+02 : f32
    %181 = vector.broadcast %cst_65 : f32 to vector<16x1xf32>
    %182 = arith.divf %180, %181 : vector<16x1xf32>
    %183 = vector.broadcast %182 : vector<16x1xf32> to vector<16x128xf32>
    %184 = arith.subf %174, %183 : vector<16x128xf32>
    %185 = arith.mulf %184, %184 : vector<16x128xf32>
    %cst_66 = arith.constant dense<0.000000e+00> : vector<16xf32>
    %186 = vector.multi_reduction <add>, %185, %cst_66 [1] : vector<16x128xf32> to vector<16xf32>
    %187 = vector.shape_cast %186 : vector<16xf32> to vector<16x1xf32>
    %cst_67 = arith.constant 1.280000e+02 : f32
    %188 = vector.broadcast %cst_67 : f32 to vector<16x1xf32>
    %189 = arith.divf %187, %188 : vector<16x1xf32>
    %cst_68 = arith.constant 9.99999997E-7 : f32
    %190 = vector.broadcast %cst_68 : f32 to vector<16x1xf32>
    %191 = arith.addf %189, %190 : vector<16x1xf32>
    %192 = math.rsqrt %191 : vector<16x1xf32>
    %193 = vector.broadcast %192 : vector<16x1xf32> to vector<16x128xf32>
    %194 = arith.mulf %184, %193 : vector<16x128xf32>
    %195 = vector.broadcast %176 : vector<1x128xf32> to vector<16x128xf32>
    %196 = arith.mulf %194, %195 : vector<16x128xf32>
    %197 = vector.broadcast %178 : vector<1x128xf32> to vector<16x128xf32>
    %198 = arith.addf %196, %197 : vector<16x128xf32>
    %199 = arith.truncf %198 : vector<16x128xf32> to vector<16x128xbf16>
    %c0_69 = arith.constant 0 : index
    %c0_70 = arith.constant 0 : index
    %c0_71 = arith.constant 0 : index
    %200 = vector.load %arg12[%c0_69, %c0_70, %c0_71] : memref<1x128x256xbf16, #tpu.memory_space<vmem>>, vector<1x128x256xbf16>
    %201 = vector.shape_cast %200 : vector<1x128x256xbf16> to vector<128x256xbf16>
    %cst_72 = arith.constant dense<0.000000e+00> : vector<16x256xf32>
    %202 = tpu.matmul %199, %201, %cst_72 {dimension_numbers = #tpu.dot_dimension_numbers<[1], [0], [0], [1], [0, 0, 1, 1], [], []>} : vector<16x128xbf16>, vector<128x256xbf16>, vector<16x256xf32> -> vector<16x256xf32>
    %c0_73 = arith.constant 0 : index
    %c0_74 = arith.constant 0 : index
    %c0_75 = arith.constant 0 : index
    %203 = vector.load %arg13[%c0_73, %c0_74, %c0_75] : memref<1x1x256xf32, #tpu.memory_space<vmem>>, vector<1x1x256xf32>
    %204 = vector.shape_cast %203 : vector<1x1x256xf32> to vector<1x256xf32>
    %205 = vector.broadcast %204 : vector<1x256xf32> to vector<16x256xf32>
    %206 = arith.addf %202, %205 : vector<16x256xf32>
    %cst_76 = arith.constant 5.000000e-01 : f32
    %207 = vector.broadcast %cst_76 : f32 to vector<16x256xf32>
    %208 = arith.mulf %207, %206 : vector<16x256xf32>
    %cst_77 = arith.constant 4.471500e-02 : f32
    %209 = vector.broadcast %cst_77 : f32 to vector<16x256xf32>
    %210 = arith.mulf %209, %206 : vector<16x256xf32>
    %211 = arith.mulf %210, %206 : vector<16x256xf32>
    %212 = arith.mulf %211, %206 : vector<16x256xf32>
    %213 = arith.addf %206, %212 : vector<16x256xf32>
    %cst_78 = arith.constant 0.797884583 : f32
    %214 = vector.broadcast %cst_78 : f32 to vector<16x256xf32>
    %215 = arith.mulf %214, %213 : vector<16x256xf32>
    %216 = math.tanh %215 : vector<16x256xf32>
    %cst_79 = arith.constant 1.000000e+00 : f32
    %217 = vector.broadcast %cst_79 : f32 to vector<16x256xf32>
    %218 = arith.addf %217, %216 : vector<16x256xf32>
    %219 = arith.mulf %208, %218 : vector<16x256xf32>
    %220 = arith.truncf %219 : vector<16x256xf32> to vector<16x256xbf16>
    %c0_80 = arith.constant 0 : index
    %c0_81 = arith.constant 0 : index
    %c0_82 = arith.constant 0 : index
    %221 = vector.load %arg14[%c0_80, %c0_81, %c0_82] : memref<1x256x128xbf16, #tpu.memory_space<vmem>>, vector<1x256x128xbf16>
    %222 = vector.shape_cast %221 : vector<1x256x128xbf16> to vector<256x128xbf16>
    %cst_83 = arith.constant dense<0.000000e+00> : vector<16x128xf32>
    %223 = tpu.matmul %220, %222, %cst_83 {dimension_numbers = #tpu.dot_dimension_numbers<[1], [0], [0], [1], [0, 0, 1, 1], [], []>} : vector<16x256xbf16>, vector<256x128xbf16>, vector<16x128xf32> -> vector<16x128xf32>
    %c0_84 = arith.constant 0 : index
    %c0_85 = arith.constant 0 : index
    %c0_86 = arith.constant 0 : index
    %224 = vector.load %arg15[%c0_84, %c0_85, %c0_86] : memref<1x1x128xf32, #tpu.memory_space<vmem>>, vector<1x1x128xf32>
    %225 = vector.shape_cast %224 : vector<1x1x128xf32> to vector<1x128xf32>
    %226 = vector.broadcast %225 : vector<1x128xf32> to vector<16x128xf32>
    %227 = arith.addf %223, %226 : vector<16x128xf32>
    %228 = arith.addf %174, %227 : vector<16x128xf32>
    %c0_87 = arith.constant 0 : index
    %c0_88 = arith.constant 0 : index
    %229 = vector.load %arg19[%c0_87, %c0_88] : memref<16x128xf32, #tpu.memory_space<vmem>>, vector<16x128xf32>
    tpu.vector_store %arg19[%c0_87, %c0_88], %228 {strides = array<i32>} : memref<16x128xf32, #tpu.memory_space<vmem>>, vector<16x128xf32>,
    %c1_i32_89 = arith.constant 1 : i32
    %230 = arith.cmpi eq, %arg0, %c1_i32_89 : i32
    %231 = arith.extui %230 : i1 to i32
    %c0_i32_90 = arith.constant 0 : i32
    %232 = arith.cmpi ne, %231, %c0_i32_90 : i32
    scf.if %232 {
      %233 = vector.extract_strided_slice %228 {offsets = [0, 0], sizes = [2, 128], strides = [1, 1]} : vector<16x128xf32> to vector<2x128xf32>
      %c0_91 = arith.constant 0 : index
      %c0_92 = arith.constant 0 : index
      %234 = vector.load %arg16[%c0_91, %c0_92] : memref<1x128xf32, #tpu.memory_space<vmem>>, vector<1x128xf32>
      %c0_93 = arith.constant 0 : index
      %c0_94 = arith.constant 0 : index
      %235 = vector.load %arg17[%c0_93, %c0_94] : memref<1x128xf32, #tpu.memory_space<vmem>>, vector<1x128xf32>
      %cst_95 = arith.constant dense<0.000000e+00> : vector<2xf32>
      %236 = vector.multi_reduction <add>, %233, %cst_95 [1] : vector<2x128xf32> to vector<2xf32>
      %237 = vector.shape_cast %236 : vector<2xf32> to vector<2x1xf32>
      %cst_96 = arith.constant 1.280000e+02 : f32
      %238 = vector.broadcast %cst_96 : f32 to vector<2x1xf32>
      %239 = arith.divf %237, %238 : vector<2x1xf32>
      %240 = vector.broadcast %239 : vector<2x1xf32> to vector<2x128xf32>
      %241 = arith.subf %233, %240 : vector<2x128xf32>
      %242 = arith.mulf %241, %241 : vector<2x128xf32>
      %cst_97 = arith.constant dense<0.000000e+00> : vector<2xf32>
      %243 = vector.multi_reduction <add>, %242, %cst_97 [1] : vector<2x128xf32> to vector<2xf32>
      %244 = vector.shape_cast %243 : vector<2xf32> to vector<2x1xf32>
      %cst_98 = arith.constant 1.280000e+02 : f32
      %245 = vector.broadcast %cst_98 : f32 to vector<2x1xf32>
      %246 = arith.divf %244, %245 : vector<2x1xf32>
      %cst_99 = arith.constant 9.99999997E-7 : f32
      %247 = vector.broadcast %cst_99 : f32 to vector<2x1xf32>
      %248 = arith.addf %246, %247 : vector<2x1xf32>
      %249 = math.rsqrt %248 : vector<2x1xf32>
      %250 = vector.broadcast %249 : vector<2x1xf32> to vector<2x128xf32>
      %251 = arith.mulf %241, %250 : vector<2x128xf32>
      %252 = vector.broadcast %234 : vector<1x128xf32> to vector<2x128xf32>
      %253 = arith.mulf %251, %252 : vector<2x128xf32>
      %254 = vector.broadcast %235 : vector<1x128xf32> to vector<2x128xf32>
      %255 = arith.addf %253, %254 : vector<2x128xf32>
      %c0_100 = arith.constant 0 : index
      %c0_101 = arith.constant 0 : index
      %256 = vector.load %arg18[%c0_100, %c0_101] : memref<2x128xf32, #tpu.memory_space<vmem>>, vector<2x128xf32>
      tpu.vector_store %arg18[%c0_100, %c0_101], %255 {strides = array<i32>} : memref<2x128xf32, #tpu.memory_space<vmem>>, vector<2x128xf32>,
    } else {
    }
    return
  }
  func.func @transform_0(%arg0: i32) -> (i32, i32) {
    %c0_i32 = arith.constant 0 : i32
    %c0_i32_0 = arith.constant 0 : i32
    %c0_i32_1 = arith.constant 0 : i32
    return %c0_i32, %c0_i32_0 : i32, i32
  }
  func.func @transform_1(%arg0: i32) -> (i32, i32) {
    %c0_i32 = arith.constant 0 : i32
    %c0_i32_0 = arith.constant 0 : i32
    %c0_i32_1 = arith.constant 0 : i32
    return %c0_i32, %c0_i32_0 : i32, i32
  }
  func.func @transform_2(%arg0: i32) -> (i32, i32) {
    %c0_i32 = arith.constant 0 : i32
    %c0_i32_0 = arith.constant 0 : i32
    %c0_i32_1 = arith.constant 0 : i32
    return %c0_i32, %c0_i32_0 : i32, i32
  }
  func.func @transform_3(%arg0: i32) -> (i32, i32, i32) {
    %c0_i32 = arith.constant 0 : i32
    %c0_i32_0 = arith.constant 0 : i32
    %c0_i32_1 = arith.constant 0 : i32
    return %arg0, %c0_i32, %c0_i32_0 : i32, i32, i32
  }
  func.func @transform_4(%arg0: i32) -> (i32, i32, i32) {
    %c0_i32 = arith.constant 0 : i32
    %c0_i32_0 = arith.constant 0 : i32
    %c0_i32_1 = arith.constant 0 : i32
    return %arg0, %c0_i32, %c0_i32_0 : i32, i32, i32
  }
  func.func @transform_5(%arg0: i32) -> (i32, i32, i32) {
    %c0_i32 = arith.constant 0 : i32
    %c0_i32_0 = arith.constant 0 : i32
    %c0_i32_1 = arith.constant 0 : i32
    return %arg0, %c0_i32, %c0_i32_0 : i32, i32, i32
  }
  func.func @transform_6(%arg0: i32) -> (i32, i32, i32) {
    %c0_i32 = arith.constant 0 : i32
    %c0_i32_0 = arith.constant 0 : i32
    %c0_i32_1 = arith.constant 0 : i32
    return %arg0, %c0_i32, %c0_i32_0 : i32, i32, i32
  }
  func.func @transform_7(%arg0: i32) -> (i32, i32, i32) {
    %c0_i32 = arith.constant 0 : i32
    %c0_i32_0 = arith.constant 0 : i32
    %c0_i32_1 = arith.constant 0 : i32
    return %arg0, %c0_i32, %c0_i32_0 : i32, i32, i32
  }
  func.func @transform_8(%arg0: i32) -> (i32, i32, i32) {
    %c0_i32 = arith.constant 0 : i32
    %c0_i32_0 = arith.constant 0 : i32
    %c0_i32_1 = arith.constant 0 : i32
    return %arg0, %c0_i32, %c0_i32_0 : i32, i32, i32
  }
  func.func @transform_9(%arg0: i32) -> (i32, i32, i32) {
    %c0_i32 = arith.constant 0 : i32
    %c0_i32_0 = arith.constant 0 : i32
    %c0_i32_1 = arith.constant 0 : i32
    return %arg0, %c0_i32, %c0_i32_0 : i32, i32, i32
  }
  func.func @transform_10(%arg0: i32) -> (i32, i32, i32) {
    %c0_i32 = arith.constant 0 : i32
    %c0_i32_0 = arith.constant 0 : i32
    %c0_i32_1 = arith.constant 0 : i32
    return %arg0, %c0_i32, %c0_i32_0 : i32, i32, i32
  }
  func.func @transform_11(%arg0: i32) -> (i32, i32, i32) {
    %c0_i32 = arith.constant 0 : i32
    %c0_i32_0 = arith.constant 0 : i32
    %c0_i32_1 = arith.constant 0 : i32
    return %arg0, %c0_i32, %c0_i32_0 : i32, i32, i32
  }
  func.func @transform_12(%arg0: i32) -> (i32, i32, i32) {
    %c0_i32 = arith.constant 0 : i32
    %c0_i32_0 = arith.constant 0 : i32
    %c0_i32_1 = arith.constant 0 : i32
    return %arg0, %c0_i32, %c0_i32_0 : i32, i32, i32
  }
  func.func @transform_13(%arg0: i32) -> (i32, i32, i32) {
    %c0_i32 = arith.constant 0 : i32
    %c0_i32_0 = arith.constant 0 : i32
    %c0_i32_1 = arith.constant 0 : i32
    return %arg0, %c0_i32, %c0_i32_0 : i32, i32, i32
  }
  func.func @transform_14(%arg0: i32) -> (i32, i32, i32) {
    %c0_i32 = arith.constant 0 : i32
    %c0_i32_0 = arith.constant 0 : i32
    %c0_i32_1 = arith.constant 0 : i32
    return %arg0, %c0_i32, %c0_i32_0 : i32, i32, i32
  }
  func.func @transform_15(%arg0: i32) -> (i32, i32) {
    %c0_i32 = arith.constant 0 : i32
    %c0_i32_0 = arith.constant 0 : i32
    %c0_i32_1 = arith.constant 0 : i32
    return %c0_i32, %c0_i32_0 : i32, i32
  }
  func.func @transform_16(%arg0: i32) -> (i32, i32) {
    %c0_i32 = arith.constant 0 : i32
    %c0_i32_0 = arith.constant 0 : i32
    %c0_i32_1 = arith.constant 0 : i32
    return %c0_i32, %c0_i32_0 : i32, i32
  }
  func.func @transform_17(%arg0: i32) -> (i32, i32) {
    %c0_i32 = arith.constant 0 : i32
    %c0_i32_0 = arith.constant 0 : i32
    %c0_i32_1 = arith.constant 0 : i32
    return %c0_i32, %c0_i32_0 : i32, i32
  }
}

</mosaic_0001>

<bundles_post_ra>
// kernel: tpu_custom_call.1
= control target key start
LH: loop header
LB: loop body
LE: loop exit
PB: predicated region body
PF: predicated region fallthrough
CT: control target
= control target key end

     0   :  { %s4894_s0 = inlined_call_operand.hbm [shape: bf16[16,768], index: 0, kind: input, shape index: {}]   ;;  %s4895_s1 = inlined_call_operand.hbm [shape: bf16[768,128], index: 1, kind: input, shape index: {}]   ;;  %s4896_s2 = inlined_call_operand.hbm [shape: f32[16,128], index: 2, kind: input, shape index: {}]   ;;  %s4897_s3 = inlined_call_operand.vmem [shape: f32[2,1,128], index: 3, kind: input, shape index: {}]   ;;  %s4898_s4 = inlined_call_operand.hbm [shape: f32[2,1,128], index: 4, kind: input, shape index: {}]   ;;  %s4899_s5 = inlined_call_operand.hbm [shape: bf16[2,128,384], index: 5, kind: input, shape index: {}]   ;;  %s4900_s6 = inlined_call_operand.hbm [shape: f32[2,1,384], index: 6, kind: input, shape index: {}]   ;;  %s4901_s7 = inlined_call_operand.hbm [shape: bf16[2,128,128], index: 7, kind: input, shape index: {}]   ;;  %s4902_s8 = inlined_call_operand.hbm [shape: f32[2,1,128], index: 8, kind: input, shape index: {}]   ;;  %s4903_s9 = inlined_call_operand.vmem [shape: f32[2,1,128], index: 9, kind: input, shape index: {}]   ;;  %s4904_s10 = inlined_call_operand.hbm [shape: f32[2,1,128], index: 10, kind: input, shape index: {}]   ;;  %s4905_s11 = inlined_call_operand.hbm [shape: bf16[2,128,256], index: 11, kind: input, shape index: {}]   ;;  %s4906_s12 = inlined_call_operand.vmem [shape: f32[2,1,256], index: 12, kind: input, shape index: {}]   ;;  %s4907_s13 = inlined_call_operand.hbm [shape: bf16[2,256,128], index: 13, kind: input, shape index: {}]   ;;  %s4908_s14 = inlined_call_operand.vmem [shape: f32[2,1,128], index: 14, kind: input, shape index: {}]   ;;  %s4909_s15 = inlined_call_operand.vmem [shape: f32[1,128], index: 15, kind: input, shape index: {}]   ;;  %s4910_s16 = inlined_call_operand.vmem [shape: f32[1,128], index: 16, kind: input, shape index: {}]   ;;  %s4911_s17 = inlined_call_operand.hbm [shape: f32[2,128], index: 17, kind: output, shape index: {}]  }
   0x1   :  { %4929 = sst [smem:[#allocation36_spill]] %s4894_s0 }
   0x2   :  { %4930 = sst [smem:[#allocation37_spill]] %s4895_s1 }
   0x3   :  { %4931 = sst [smem:[#allocation38_spill]] %s4897_s3 }
   0x4   :  { %4932 = sst [smem:[#allocation39_spill]] %s4898_s4 }
   0x5   :  { %4933 = sst [smem:[#allocation40_spill]] %s4900_s6 }
   0x6   :  { %4934 = sst [smem:[#allocation41_spill]] %s4902_s8 }
   0x7   :  { %4935 = sst [smem:[#allocation42_spill]] %s4903_s9 }
   0x8   :  { %4936 = sst [smem:[#allocation43_spill]] %s4905_s11 }
   0x9   :  { %4937 = sst [smem:[#allocation44_spill]] %s4906_s12 }
   0xa   :  { %4938 = sst [smem:[#allocation45_spill]] %s4908_s14 }
   0xb   :  { %4939 = sst [smem:[#allocation46_spill]] %s4909_s15 }
   0xc   :  { %4940 = sst [smem:[#allocation47_spill]] %s4910_s16 }
   0xd   :  { %4941 = sst [smem:[#allocation48_spill]] %s4911_s17 }
   0xe   :  { %22 = vsyncpa [#allocation4], 0 }
   0xf   :  { %23 = vsyncpa [#allocation7], 0 }
  0x10   :  { %24 = vsyncpa [#allocation10], 0 }
  0x11   :  { %26 = vsyncpa [#allocation10 + $0x1], 0 }
  0x12   :  { %27 = vsyncpa [#allocation13], 0 }
  0x13   :  { %29 = vsyncpa [#allocation13 + $0x1], 0 }
  0x14   :  { %30 = vsyncpa [#allocation16], 0 }
  0x15   :  { %32 = vsyncpa [#allocation16 + $0x1], 0 }
  0x16   :  { %33 = vsyncpa [#allocation19], 0 }
  0x17   :  { %35 = vsyncpa [#allocation19 + $0x1], 0 }
  0x18   :  { %36 = vsyncpa [#allocation5], 0  ;;  %s4304_s24 = smov 0   ;;  %s4306_s25 = smov 0  }
  0x19   :  { %s4308_s26 = smov 0   ;;  %s4310_s27 = smov 0  }
  0x1a LB: > { %4942 = sst [smem:[#allocation29_spill]] %s4187_s25  ;;  %s4323_s28 = sadd.s32 4294967295, %s4195_s27   ;;  %s4195_s27 = sphi %s4310_s27, %s4986_s27   ;;  %s4191_s26 = sphi %s4308_s26, %s4989_s26   ;;  %s4187_s25 = sphi %s4306_s25, %s4988_s25   ;;  %s4183_s24 = sphi %s4304_s24, %s4987_s24  }
  0x1b   : > { %4943 = sst [smem:[#allocation30_spill]] %s4191_s26  ;;  %s4326_s29 = sadd.s32 1, %s4195_s27  }
  0x1c   : > { %4944 = sst [smem:[#allocation31_spill]] %s4323_s28  ;;  %s135_s0 = ssub.s32 %s4195_s27, %s4326_s29 }
  0x1d   : > { %4945 = sst [smem:[#allocation32_spill]] %s4326_s29  ;;  %s138_s30 = sadd.s32 1, %s4191_s26 }
  0x1e   : > { %p136_p0 = scmp.eq.s32.totalorder %s135_s0, 0  ;;  %p145_p1 = scmp.ne.s32.totalorder %s4191_s26, %s4187_s25 }
  0x1f   : > { %p146_p2 = scmp.eq.s32.totalorder %s4195_s27, 0  ;;  %p151_p3 = scmp.ne.s32.totalorder %s4187_s25, %s4183_s24 }
  0x20   : > { %s4336_s18 = scalar_select %p136_p0, %s4191_s26, %s138_s30  }
  0x21   : > { %p4338_p4 = por %p146_p2, %p145_p1  ;;  %p152_p5 = scmp.eq.s32.totalorder %s4323_s28, 0 }
  0x22   : > { %4946 = sst [smem:[#allocation33_spill]] %s4336_s18  ;;  %p2953_p6 = scmp.ge.s32.totalorder %s4195_s27, 1 }
  0x23   : > { %p485_p7 = scmp.lt.s32.totalorder %s4195_s27, 3  ;;  %p4347_p8 = por %p152_p5, %p151_p3 }
  0x24   : > { %p2954_p9 = scmp.ne.s32.totalorder %s4323_s28, 0  ;;  %s4952_s23 = sld [smem:[#allocation37_spill]] }
  0x25   : > { %s4948_s1 = scalar_select %p4347_p8, 1, 0 }
  0x26   : > { %p4352_p10 = pnand %p2953_p6, %p485_p7  ;;  %s4197_s0 = smov [#allocation6]  }
  0x27   : > { %4949 = sst [smem:[#allocation34_spill]] %s4948_s1  ;;  %s512_s30 = sshll.u32 %s4197_s0, 4  ;;  %s513_s30 = int_to_ptr.vmem [resolvable:$true] %s512_s30 }
  0x28   : > { %s4950_s20 = scalar_select %p4352_p10, 1, 0 }
  0x29   : > { %p3625_p11 = pneg %p4352_p10  ;;  %p3663_p13 = scmp.lt.s32.totalorder %s4195_s27, 2 }
  0x2a   : > { %4951 = sst [smem:[#allocation35_spill]] %s4950_s20  ;;  %s510_s24 = sshll.u32 %s4952_s23, 4  ;;  %s511_s24 = int_to_ptr.hbm [resolvable:$true] %s510_s24 }
  0x2b   : > { %p4363_p12 = pnand %p3625_p11, %p152_p5  ;;  %s4369_s29 = sand.u32 1, %s4195_s27  }
  0x2c   : > { %s4914_s17 = smov 64   ;;  %s4916_s21 = smov 4  }
  0x2d   : > { %3631 = dma.hbm_to_vmem [thread:$0]  (!%p4363_p12), %s511_s24, 6144, %s513_s30, [#allocation7], %s4914_s17, %s4914_s17, %s4916_s21  }
  0x2e   : > { %p4378_p0 = pnand %p3663_p13, %p4338_p4  ;;  %s4383_s23 = sand.u32 1, %s4191_s26  }
  0x2f   : > { %s4955_s4 = sld [smem:[#allocation39_spill]]  ;;  %s555_s14 = scalar_lea.vmem [#allocation9], %s4383_s23 }
  0x30   : > { %s562_s9 = sshll.u32 %s555_s14, 4  ;;  %s4927_s3 = scalar_lea.sflag [#allocation10], %s4369_s29  ;;  %s563_s9 = int_to_ptr.vmem [resolvable:$true] %s562_s9 }
  0x31   : > { %p4393_p2 = pneg %p4378_p0 }
  0x35   : > { %s558_s15 = scalar_lea.hbm %s4955_s4, %s4195_s27  ;;  %s3816_s14 = scalar_lea.hbm %s4955_s4, 2 }
  0x36   : > { %s560_s12 = sshll.u32 %s558_s15, 4  ;;  %s561_s12 = int_to_ptr.hbm [resolvable:$true] %s560_s12 }
  0x37   : > { %s3809_s24 = sshra.s32 %s561_s12, 4  ;;  %s3810_s24 = int_to_ptr.hbm [resolvable:$true] %s3809_s24 }
  0x38   : > { %s3811_s19 = scalar_lea.hbm %s3810_s24, 1  ;;  %p3817_p6 = scmp.lt.s32.totalorder %s3810_s24, %s4955_s4 }
  0x39   : > { %p3812_p1 = scmp.ne.s32.totalorder %s3810_s24, %s3811_s19  ;;  %p3818_p7 = scmp.lt.s32.totalorder %s3816_s14, %s3811_s19 }
  0x3b   : > { %p3814_p3 = pnand %p4393_p2, %p3812_p1  ;;  %p3819_p11 = por %p3818_p7, %p3817_p6 }
  0x3d   : > { %p3815_p4 = pneg %p3814_p3 }
  0x3f   : > { %p3820_p13 = pnand %p3819_p11, %p3815_p4 }
  0x41   : > { %3823 = shalt.err (!%p3820_p13)
}
  0x42   : > { %3638 = dma.hbm_to_vmem [thread:$0]  (!%p4378_p0), %s561_s12, 16, %s563_s9, %s4927_s3  }
  0x43   : > { %s3589_s16 = smul.u32 3, %s4383_s23  ;;  %s4957_s6 = sld [smem:[#allocation40_spill]] }
  0x44   : > { %s3590_s15 = smul.u32 3, %s4195_s27  ;;  %s4958_s8 = sld [smem:[#allocation41_spill]] }
  0x45   : > { %s595_s24 = scalar_lea.vmem [#allocation12], %s3589_s16  ;;  %s4926_s25 = scalar_lea.sflag [#allocation13], %s4369_s29 }
  0x46   : > { %s603_s19 = sshll.u32 %s595_s24, 4  ;;  %s604_s19 = int_to_ptr.vmem [resolvable:$true] %s603_s19 }
  0x49   : > { %s599_s17 = scalar_lea.hbm %s4957_s6, %s3590_s15  ;;  %s3846_s26 = scalar_lea.hbm %s4957_s6, 6 }
  0x4a   : > { %s601_s14 = sshll.u32 %s599_s17, 4  ;;  %s638_s1 = scalar_lea.hbm %s4958_s8, %s4195_s27  ;;  %s602_s14 = int_to_ptr.hbm [resolvable:$true] %s601_s14 }
  0x4b   : > { %s3839_s28 = sshra.s32 %s602_s14, 4  ;;  %s3840_s28 = int_to_ptr.hbm [resolvable:$true] %s3839_s28 }
  0x4c   : > { %s3841_s20 = scalar_lea.hbm %s3840_s28, 3  ;;  %p3847_p6 = scmp.lt.s32.totalorder %s3840_s28, %s4957_s6 }
  0x4d   : > { %p3842_p1 = scmp.ne.s32.totalorder %s3840_s28, %s3841_s20  ;;  %p3848_p7 = scmp.lt.s32.totalorder %s3846_s26, %s3841_s20 }
  0x4f   : > { %p3844_p3 = pnand %p3842_p1, %p4393_p2  ;;  %p3849_p11 = por %p3848_p7, %p3847_p6 }
  0x51   : > { %p3845_p4 = pneg %p3844_p3 }
  0x53   : > { %p3850_p13 = pnand %p3849_p11, %p3845_p4 }
  0x55   : > { %3853 = shalt.err (!%p3850_p13)
}
  0x56   : > { %3644 = dma.hbm_to_vmem [thread:$0]  (!%p4378_p0), %s602_s14, 48, %s604_s19, %s4926_s25  }
  0x57   : > { %s640_s4 = sshll.u32 %s638_s1, 4  ;;  %s635_s15 = scalar_lea.vmem [#allocation15], %s4383_s23  ;;  %s641_s4 = int_to_ptr.hbm [resolvable:$true] %s640_s4 }
  0x58   : > { %s642_s17 = sshll.u32 %s635_s15, 4  ;;  %s4925_s24 = scalar_lea.sflag [#allocation16], %s4369_s29  ;;  %s643_s17 = int_to_ptr.vmem [resolvable:$true] %s642_s17 }
  0x59   : > { %s3869_s0 = sshra.s32 %s641_s4, 4  ;;  %s3876_s12 = scalar_lea.hbm %s4958_s8, 2  ;;  %s3870_s0 = int_to_ptr.hbm [resolvable:$true] %s3869_s0 }
  0x5a   : > { %s3871_s28 = scalar_lea.hbm %s3870_s0, 1  ;;  %p3877_p6 = scmp.lt.s32.totalorder %s3870_s0, %s4958_s8 }
  0x5b   : > { %p3872_p1 = scmp.ne.s32.totalorder %s3870_s0, %s3871_s28  ;;  %p3878_p7 = scmp.lt.s32.totalorder %s3876_s12, %s3871_s28 }
  0x5d   : > { %p3874_p3 = pnand %p3872_p1, %p4393_p2  ;;  %p3879_p11 = por %p3878_p7, %p3877_p6 }
  0x5f   : > { %p3875_p4 = pneg %p3874_p3 }
  0x61   : > { %p3880_p13 = pnand %p3879_p11, %p3875_p4 }
  0x63   : > { %3883 = shalt.err (!%p3880_p13)
}
  0x64   : > { %3650 = dma.hbm_to_vmem [thread:$0]  (!%p4378_p0), %s641_s4, 16, %s643_s17, %s4925_s24  }
  0x65   : > { %s2962_s1 = sshll.u32 %s4383_s23, 7  ;;  %s3467_s19 = sshll.u32 %s4195_s27, 7 }
  0x66   : > { %s4959_s11 = sld [smem:[#allocation43_spill]]  ;;  %s676_s0 = scalar_lea.vmem [#allocation18], %s2962_s1 }
  0x67   : > { %s684_s28 = sshll.u32 %s676_s0, 4  ;;  %s4928_s9 = scalar_lea.sflag [#allocation19], %s4369_s29  ;;  %s685_s28 = int_to_ptr.vmem [resolvable:$true] %s684_s28 }
  0x6c   : > { %s681_s15 = scalar_lea.hbm %s4959_s11, %s3467_s19  ;;  %s3906_s21 = scalar_lea.hbm %s4959_s11, 256 }
  0x6d   : > { %s682_s20 = sshll.u32 %s681_s15, 4  ;;  %s683_s20 = int_to_ptr.hbm [resolvable:$true] %s682_s20 }
  0x6e   : > { %s3899_s12 = sshra.s32 %s683_s20, 4  ;;  %s3900_s12 = int_to_ptr.hbm [resolvable:$true] %s3899_s12 }
  0x6f   : > { %s3901_s26 = scalar_lea.hbm %s3900_s12, 128  ;;  %p3907_p6 = scmp.lt.s32.totalorder %s3900_s12, %s4959_s11 }
  0x70   : > { %p3902_p1 = scmp.ne.s32.totalorder %s3900_s12, %s3901_s26  ;;  %p3908_p7 = scmp.lt.s32.totalorder %s3906_s21, %s3901_s26 }
  0x72   : > { %p3904_p3 = pnand %p3902_p1, %p4393_p2  ;;  %p3909_p11 = por %p3908_p7, %p3907_p6 }
  0x74   : > { %p3905_p4 = pneg %p3904_p3 }
  0x76   : > { %p3910_p13 = pnand %p3909_p11, %p3905_p4 }
  0x78   : > { %3913 = shalt.err (!%p3910_p13)
}
  0x79   : > { %s4200_s16 = smov 128   ;;  %s4201_s15 = smov 8  }
  0x7a   : > { %3656 = dma.hbm_to_vmem [thread:$0]  (!%p4378_p0), %s683_s20, 2048, %s685_s28, %s4928_s9, %s4200_s16, %s4200_s16, %s4201_s15  }
  0x7b   : > { %s710_s4 = scalar_lea.hbm %s4907_s13, %s3467_s19  ;;  %s705_s17 = scalar_lea.vmem [#allocation20], %s2962_s1 }
  0x7c   : > { %s713_s3 = sshll.u32 %s705_s17, 4  ;;  %s711_s24 = sshll.u32 %s710_s4, 4  ;;  %s4466_s3 = int_to_ptr.vmem [resolvable:$true] %s713_s3  ;;  %s4468_s24 = int_to_ptr.hbm [resolvable:$true] %s711_s24 }
  0x7d   : > { %s4960_s21 = sld [smem:[#allocation36_spill]]  ;;  %s4202_s28 = smov [#allocation3]  }
  0x7e   : > { %s498_s20 = sshll.u32 %s4202_s28, 4  ;;  %s4203_s25 = smov 384   ;;  %s499_s20 = int_to_ptr.vmem [resolvable:$true] %s498_s20 }
  0x7f   : > { %s4204_s19 = smov 24   ;;  %s524_s4 = sshll.u32 %s4896_s2, 4  ;;  %s525_s4 = int_to_ptr.hbm [resolvable:$true] %s524_s4 }
  0x80   : > { %s4205_s17 = smov [#allocation8]   ;;  %s3587_s12 = smul.u32 192, %s4383_s23 }
  0x81   : > { %s526_s9 = sshll.u32 %s4205_s17, 4  ;;  %s3588_s26 = smul.u32 192, %s4195_s27  ;;  %s527_s9 = int_to_ptr.vmem [resolvable:$true] %s526_s9 }
  0x82   : > { %3634 = dma.hbm_to_vmem [thread:$0]  (!%p4363_p12), %s525_s4, 256, %s527_s9, [#allocation7], %s4200_s16, %s4200_s16, %s4201_s15  }
  0x83   : > { %s496_s14 = sshll.u32 %s4960_s21, 4  ;;  %s573_s21 = scalar_lea.vmem [#allocation11], %s3587_s12  ;;  %s497_s14 = int_to_ptr.hbm [resolvable:$true] %s496_s14 }
  0x84   : > { %3628 = dma.hbm_to_vmem [thread:$0]  (!%p4363_p12), %s497_s14, 768, %s499_s20, [#allocation4], %s4203_s25, %s4203_s25, %s4204_s19  }
  0x85   : > { %s581_s28 = sshll.u32 %s573_s21, 4  ;;  %s578_s11 = scalar_lea.hbm %s4899_s5, %s3588_s26  ;;  %s582_s28 = int_to_ptr.vmem [resolvable:$true] %s581_s28 }
  0x86   : > { %s579_s14 = sshll.u32 %s578_s11, 4  ;;  %s2959_s20 = sshll.u32 %s4383_s23, 6  ;;  %s580_s14 = int_to_ptr.hbm [resolvable:$true] %s579_s14 }
  0x87   : > { %s3989_s25 = sshra.s32 %s580_s14, 4  ;;  %s3996_s16 = scalar_lea.hbm %s4899_s5, 384  ;;  %s3990_s25 = int_to_ptr.hbm [resolvable:$true] %s3989_s25 }
  0x88   : > { %s3991_s19 = scalar_lea.hbm %s3990_s25, 192  ;;  %p3997_p12 = scmp.lt.s32.totalorder %s3990_s25, %s4899_s5 }
  0x89   : > { %p3992_p1 = scmp.ne.s32.totalorder %s3990_s25, %s3991_s19  ;;  %p3998_p6 = scmp.lt.s32.totalorder %s3996_s16, %s3991_s19 }
  0x8b   : > { %p3994_p3 = pnand %p3992_p1, %p4393_p2  ;;  %p3999_p7 = por %p3998_p6, %p3997_p12 }
  0x8d   : > { %p3995_p4 = pneg %p3994_p3 }
  0x8f   : > { %p4000_p11 = pnand %p3999_p7, %p3995_p4 }
  0x91   : > { %4003 = shalt.err (!%p4000_p11)
}
  0x92   : > { %s4206_s6 = smov 192   ;;  %s4207_s8 = smov 12  }
  0x93   : > { %s4961_s11 = scalar_lea.sflag [#allocation10], %s4369_s29  ;;  %s3466_s0 = sshll.u32 %s4195_s27, 6 }
  0x94   : > { %3641 = dma.hbm_to_vmem [thread:$0]  (!%p4378_p0), %s580_s14, 3072, %s582_s28, %s4961_s11, %s4206_s6, %s4206_s6, %s4207_s8  }
  0x95   : > { %s619_s12 = scalar_lea.hbm %s4901_s7, %s3466_s0  ;;  %s614_s26 = scalar_lea.vmem [#allocation14], %s2959_s20 }
  0x96   : > { %s622_s21 = sshll.u32 %s614_s26, 4  ;;  %s620_s25 = sshll.u32 %s619_s12, 4  ;;  %s623_s21 = int_to_ptr.vmem [resolvable:$true] %s622_s21  ;;  %s621_s25 = int_to_ptr.hbm [resolvable:$true] %s620_s25 }
  0x97   : > { %s4019_s19 = sshra.s32 %s621_s25, 4  ;;  %s4026_s28 = scalar_lea.hbm %s4901_s7, 128  ;;  %s4020_s19 = int_to_ptr.hbm [resolvable:$true] %s4019_s19 }
  0x98   : > { %s4021_s18 = scalar_lea.hbm %s4020_s19, 64  ;;  %p4027_p4 = scmp.lt.s32.totalorder %s4020_s19, %s4901_s7 }
  0x99   : > { %p4022_p13 = scmp.ne.s32.totalorder %s4020_s19, %s4021_s18  ;;  %p4028_p12 = scmp.lt.s32.totalorder %s4026_s28, %s4021_s18 }
  0x9b   : > { %p4024_p1 = pnand %p4022_p13, %p4393_p2  ;;  %p4029_p6 = por %p4028_p12, %p4027_p4 }
  0x9d   : > { %p4025_p3 = pneg %p4024_p1 }
  0x9f   : > { %p4030_p7 = pnand %p4029_p6, %p4025_p3 }
  0xa1   : > { %4033 = shalt.err (!%p4030_p7)
}
  0xa2   : > { %s4962_s20 = smov 4   ;;  %s4963_s1 = smov 64  }
  0xa3   : > { %s4964_s6 = scalar_lea.sflag [#allocation13], %s4369_s29  ;;  %s661_s0 = scalar_lea.hbm %s4904_s10, %s4195_s27 }
  0xa4   : > { %3647 = dma.hbm_to_vmem [thread:$0]  (!%p4378_p0), %s621_s25, 1024, %s623_s21, %s4964_s6, %s4963_s1, %s4963_s1, %s4962_s20  }
  0xa5   : > { %s658_s4 = scalar_lea.vmem [#allocation17], %s4383_s23  ;;  %s663_s12 = sshll.u32 %s661_s0, 4  ;;  %s664_s12 = int_to_ptr.hbm [resolvable:$true] %s663_s12 }
  0xa6   : > { %s665_s17 = sshll.u32 %s658_s4, 4  ;;  %s4049_s26 = sshra.s32 %s664_s12, 4  ;;  %s666_s17 = int_to_ptr.vmem [resolvable:$true] %s665_s17  ;;  %s4050_s26 = int_to_ptr.hbm [resolvable:$true] %s4049_s26 }
  0xa7   : > { %s4051_s19 = scalar_lea.hbm %s4050_s26, 1  ;;  %s4056_s21 = scalar_lea.hbm %s4904_s10, 2 }
  0xa8   : > { %p4052_p11 = scmp.ne.s32.totalorder %s4050_s26, %s4051_s19  ;;  %p4057_p3 = scmp.lt.s32.totalorder %s4050_s26, %s4904_s10 }
  0xa9   : > { %p4058_p4 = scmp.lt.s32.totalorder %s4056_s21, %s4051_s19 }
  0xaa   : > { %p4054_p13 = pnand %p4052_p11, %p4393_p2 }
  0xab   : > { %p4059_p12 = por %p4058_p4, %p4057_p3 }
  0xac   : > { %p4055_p1 = pneg %p4054_p13 }
  0xae   : > { %p4060_p6 = pnand %p4059_p12, %p4055_p1 }
  0xb0   : > { %4063 = shalt.err (!%p4060_p6)
}
  0xb1   : > { %s4965_s27 = scalar_lea.sflag [#allocation16], %s4369_s29  ;;  %s4079_s23 = sshra.s32 %s4468_s24, 4  ;;  %s4080_s23 = int_to_ptr.hbm [resolvable:$true] %s4079_s23 }
  0xb2   : > { %3653 = dma.hbm_to_vmem [thread:$0]  (!%p4378_p0), %s664_s12, 16, %s666_s17, %s4965_s27  }
  0xb3   : > { %s4081_s28 = scalar_lea.hbm %s4080_s23, 128  ;;  %s4086_s6 = scalar_lea.hbm %s4907_s13, 256 }
  0xb4   : > { %p4082_p7 = scmp.ne.s32.totalorder %s4080_s23, %s4081_s28  ;;  %p4087_p1 = scmp.lt.s32.totalorder %s4080_s23, %s4907_s13 }
  0xb5   : > { %p4088_p3 = scmp.lt.s32.totalorder %s4086_s6, %s4081_s28 }
  0xb6   : > { %p4084_p11 = pnand %p4082_p7, %p4393_p2 }
  0xb7   : > { %p4089_p4 = por %p4088_p3, %p4087_p1 }
  0xb8   : > { %p4085_p13 = pneg %p4084_p11 }
  0xba   : > { %p4090_p12 = pnand %p4089_p4, %p4085_p13 }
  0xbc   : > { %4093 = shalt.err (!%p4090_p12)
}
  0xbd   : > { %s4966_s30 = scalar_lea.sflag [#allocation19], %s4369_s29  ;;  %731 = sbr.rel (%p4352_p10) target bundleno = 3184 (0xc70), region = 88 }
  0xbe   : > { %3659 = dma.hbm_to_vmem [thread:$0]  (!%p4378_p0), %s4468_s24, 2048, %s4466_s3, %s4966_s30, %s4963_s1, %s4963_s1, %s4962_s20  }
  0xbf   : > { %s4968_s4 = sld [smem:[#allocation31_spill]] (!%p4352_p10) }
  0xc2   : > { %4154 = dma.done.wait (%p152_p5), [#allocation4], 768  }
  0xc3   : > { %4156 = vsyncadd (%p152_p5), [#allocation4], 4294966528 }
  0xc4   : > { %4158 = dma.done.wait (%p152_p5), [#allocation7], 6400  }
  0xc5   : > { %4160 = vsyncadd (%p152_p5), [#allocation7], 4294960896  ;;  %s4969_s29 = sld [smem:[#allocation29_spill]]  ;;  %s748_s17 = sand.u32 1, %s4968_s4  }
  0xc6   : > { %s749_s24 = scalar_lea.sflag [#allocation10], %s748_s17 }
  0xcb   : > { %s4564_s3 = sand.u32 1, %s4969_s29  }
  0xcc   : > { %4162 = dma.done.wait (%p4347_p8), %s749_s24, 3088  }
  0xcd   : > { %4164 = vsyncadd (%p4347_p8), %s749_s24, 4294964208  ;;  %s3591_s1 = smul.u32 192, %s4564_s3  ;;  %s768_s19 = scalar_lea.sflag [#allocation13], %s748_s17 }
  0xce   : > { %s3592_s12 = smul.u32 3, %s4564_s3 }
  0xcf   : > { %s4573_s26 = scalar_lea.vmem [#allocation11], %s3591_s1 }
  0xd0   : > { %s4575_s18 = scalar_lea.vmem [#allocation12], %s3592_s12 }
  0xd1   : > { %4166 = dma.done.wait (%p4347_p8), %s768_s19, 1072  }
  0xd2   : > { %4168 = vsyncadd (%p4347_p8), %s768_s19, 4294966224  ;;  %s2972_s9 = sshll.u32 %s4564_s3, 6  ;;  %s788_s25 = scalar_lea.sflag [#allocation16], %s748_s17 }
  0xd3   : > { %s4582_s21 = scalar_lea.vmem [#allocation14], %s2972_s9 }
  0xd4   : > { %4170 = dma.done.wait (%p4347_p8), %s788_s25, 32  }
  0xd5   : > { %4172 = vsyncadd (%p4347_p8), %s788_s25, 4294967264  ;;  %s2973_s27 = sshll.u32 %s4564_s3, 7  ;;  %s806_s28 = scalar_lea.sflag [#allocation19], %s748_s17 }
  0xd6   : > { %s4591_s14 = scalar_lea.vmem [#allocation18], %s2973_s27 }
  0xd7   : > { %4174 = dma.done.wait (%p4347_p8), %s806_s28, 4096  }
  0xd8   : > { %4176 = vsyncadd (%p4347_p8), %s806_s28, 4294963200  ;;  %p911_p5 = scmp.lt.s32.totalorder %s4968_s4, 1  ;;  %s4971_s11 = sld [smem:[#allocation38_spill]] }
  0xd9   : > { %s4972_s17 = sld [smem:[#allocation42_spill]]  ;;  %s4619_s20 = scalar_lea.vmem [#allocation20], %s2973_s27 }
  0xda   : > { %s4599_s15 = scalar_select %p911_p5, %s4968_s4, 1 }
  0xdb   : > { %s4973_s19 = sld [smem:[#allocation45_spill]] }
  0xdc   : > { %s2975_s1 = sshll.u32 %s4599_s15, 1  ;;  %s4974_s23 = sld [smem:[#allocation44_spill]] }
  0xde   : > { %s913_s30 = scalar_lea.vmem %s4971_s11, %s4599_s15  ;;  %928 = sbr.rel (%p2954_p9) target bundleno = 432 (0x1b0), region = 136 }
  0xdf   : > { %s916_s24 = scalar_lea.vmem %s4972_s17, %s4599_s15 }
  0xe1   : > { %s923_s9 = scalar_lea.vmem %s4973_s19, %s4599_s15 }
  0xe2   : > { %s4617_s16 = scalar_lea.vmem %s4974_s23, %s2975_s1 }
  0xe3   : > { %v3482_v0 = vld [vmem:[#allocation6 + $0x38] sm:$0xff]  ;;  %v3481_v4 = vld [vmem:[#allocation6 + $0x30] sm:$0xff]  ;;  %v3480_v8 = vld [vmem:[#allocation6 + $0x28] sm:$0xff] }
  0xe4   : > { %v3490_v1 = vld [vmem:[#allocation6 + $0x78] sm:$0xff]  ;;  %1349 = vmatpush.bf16.msra.mxu0 %v3482_v0  ;;  %v3489_v5 = vld [vmem:[#allocation6 + $0x70] sm:$0xff]  ;;  %v3488_v9 = vld [vmem:[#allocation6 + $0x68] sm:$0xff] }
  0xe5   : > { %v3498_v2 = vld [vmem:[#allocation6 + $0xb8] sm:$0xff]  ;;  %1363 = vmatpush.bf16.msra.mxu1 %v3490_v1  ;;  %v3497_v6 = vld [vmem:[#allocation6 + $0xb0] sm:$0xff]  ;;  %v3496_v10 = vld [vmem:[#allocation6 + $0xa8] sm:$0xff] }
  0xe6   : > { %v3506_v3 = vld [vmem:[#allocation6 + $0xf8] sm:$0xff]  ;;  %1377 = vmatpush.bf16.msra.mxu2 %v3498_v2  ;;  %v3505_v7 = vld [vmem:[#allocation6 + $0xf0] sm:$0xff]  ;;  %v3504_v11 = vld [vmem:[#allocation6 + $0xe8] sm:$0xff] }
  0xe7   : > { %1391 = vmatpush.bf16.msra.mxu3 %v3506_v3  ;;  %v3479_v12 = vld [vmem:[#allocation6 + $0x20] sm:$0xff]  ;;  %v3478_v16 = vld [vmem:[#allocation6 + $0x18] sm:$0xff]  ;;  %v3477_v20 = vld [vmem:[#allocation6 + $0x10] sm:$0xff] }
  0xe8   : > { %1350 = vmatpush.bf16.msra.mxu0 %v3481_v4  ;;  %v3487_v13 = vld [vmem:[#allocation6 + $0x60] sm:$0xff]  ;;  %v3486_v17 = vld [vmem:[#allocation6 + $0x58] sm:$0xff]  ;;  %v3485_v21 = vld [vmem:[#allocation6 + $0x50] sm:$0xff] }
  0xe9   : > { %1364 = vmatpush.bf16.msra.mxu1 %v3489_v5  ;;  %v3495_v14 = vld [vmem:[#allocation6 + $0xa0] sm:$0xff]  ;;  %v3494_v18 = vld [vmem:[#allocation6 + $0x98] sm:$0xff]  ;;  %v3493_v22 = vld [vmem:[#allocation6 + $0x90] sm:$0xff] }
  0xea   : > { %1378 = vmatpush.bf16.msra.mxu2 %v3497_v6  ;;  %v3503_v15 = vld [vmem:[#allocation6 + $0xe0] sm:$0xff]  ;;  %v3502_v19 = vld [vmem:[#allocation6 + $0xd8] sm:$0xff]  ;;  %v3501_v23 = vld [vmem:[#allocation6 + $0xd0] sm:$0xff] }
  0xeb   : > { %1392 = vmatpush.bf16.msra.mxu3 %v3505_v7  ;;  %v3476_v24 = vld [vmem:[#allocation6 + $0x8] sm:$0xff]  ;;  %v3475_v28 = vld [vmem:[#allocation6] sm:$0xff]  ;;  %v3514_v31 = vld [vmem:[#allocation6 + $0x138] sm:$0xff] }
  0xec   : > { %1351 = vmatpush.bf16.msra.mxu0 %v3480_v8  ;;  %v3484_v25 = vld [vmem:[#allocation6 + $0x48] sm:$0xff]  ;;  %v3483_v29 = vld [vmem:[#allocation6 + $0x40] sm:$0xff]  ;;  %v2979_v32 = vld [vmem:[#allocation3] sm:$0xf] }
  0xed   : > { %1365 = vmatpush.bf16.msra.mxu1 %v3488_v9  ;;  %v3492_v26 = vld [vmem:[#allocation6 + $0x88] sm:$0xff]  ;;  %v3491_v30 = vld [vmem:[#allocation6 + $0x80] sm:$0xff]  ;;  %v3469_v34 = vld [vmem:[#allocation3 + $0x4] sm:$0xf] }
  0xee   : > { %1379 = vmatpush.bf16.msra.mxu2 %v3496_v10  ;;  %v3500_v27 = vld [vmem:[#allocation6 + $0xc8] sm:$0xff]  ;;  %v3522_v36 = vld [vmem:[#allocation6 + $0x178] sm:$0xff]  ;;  %v3473_v38 = vld [vmem:[#allocation3 + $0x1c] sm:$0xf0] }
  0xef   : > { %1393 = vmatpush.bf16.msra.mxu3 %v3504_v11  ;;  %v3472_v33 = vld [vmem:[#allocation3 + $0x14] sm:$0xf0]  ;;  %v2981_v35 = vld [vmem:[#allocation3 + $0x18] sm:$0xf0]  ;;  %v2987_v37 = vld [vmem:[#allocation3 + $0x8] sm:$0xf] }
  0xf0   : > { %1352 = vmatpush.bf16.msra.mxu0 %v3479_v12  ;;  %v3499_v39 = vld [vmem:[#allocation6 + $0xc0] sm:$0xff]  ;;  %v3470_v40 = vld [vmem:[#allocation3 + $0xc] sm:$0xf]  ;;  %v2989_v41 = vld [vmem:[#allocation3 + $0x20] sm:$0xf0]  ;;  %v2980_v42 = vor.u32 %v3472_v33, %v2979_v32  ;;  %v2984_v43 = vor.u32 %v3469_v34, %v2981_v35  ;;  %v2988_v44 = vor.u32 %v3473_v38, %v2987_v37 }
  0xf1   : > { %1366 = vmatpush.bf16.msra.mxu1 %v3487_v13  ;;  %v3513_v45 = vld [vmem:[#allocation6 + $0x130] sm:$0xff]  ;;  %v2992_v46 = vor.u32 %v3470_v40, %v2989_v41  ;;  %v3512_v48 = vld [vmem:[#allocation6 + $0x128] sm:$0xff]  ;;  %v3511_v50 = vld [vmem:[#allocation6 + $0x120] sm:$0xff] }
  0xf2   : > { %1380 = vmatpush.bf16.msra.mxu2 %v3495_v14  ;;  %v3521_v47 = vld [vmem:[#allocation6 + $0x170] sm:$0xff]  ;;  %v3520_v49 = vld [vmem:[#allocation6 + $0x168] sm:$0xff]  ;;  %v3519_v51 = vld [vmem:[#allocation6 + $0x160] sm:$0xff] }
  0xf3   : > { %1394 = vmatpush.bf16.msra.mxu3 %v3503_v15  ;;  %v3510_v52 = vld [vmem:[#allocation6 + $0x118] sm:$0xff]  ;;  %v3509_v54 = vld [vmem:[#allocation6 + $0x110] sm:$0xff]  ;;  %v3508_v56 = vld [vmem:[#allocation6 + $0x108] sm:$0xff] }
  0xf4   : > { %1353 = vmatpush.bf16.msra.mxu0 %v3478_v16  ;;  %v3518_v53 = vld [vmem:[#allocation6 + $0x158] sm:$0xff]  ;;  %v3517_v55 = vld [vmem:[#allocation6 + $0x150] sm:$0xff]  ;;  %v3516_v57 = vld [vmem:[#allocation6 + $0x148] sm:$0xff] }
  0xf5   : > { %1367 = vmatpush.bf16.msra.mxu1 %v3486_v17  ;;  %v3507_v58 = vld [vmem:[#allocation6 + $0x100] sm:$0xff]  ;;  %v3474_v60 = vld [vmem:[#allocation3 + $0x24] sm:$0xf0]  ;;  %v2997_v63 = vld [vmem:[#allocation3 + $0x28] sm:$0xf0] }
  0xf6   : > { %1381 = vmatpush.bf16.msra.mxu2 %v3494_v18  ;;  %v2995_v59 = vld [vmem:[#allocation3 + $0x10] sm:$0xf]  ;;  %v3471_v62 = vld [vmem:[#allocation3 + $0x14] sm:$0xf] }
  0xf7   : > { %1395 = vmatpush.bf16.msra.mxu3 %v3502_v19  ;;  %v3515_v61 = vld [vmem:[#allocation6 + $0x140] sm:$0xff]  ;;  %v2996_v0 = vor.u32 %v3474_v60, %v2995_v59  ;;  %v3000_v1 = vor.u32 %v3471_v62, %v2997_v63 }
  0xf8   : > { %1354 = vmatpush.bf16.msra.mxu0 %v3477_v20  ;;  %v1433_v16 = vld [vmem:[#allocation8] sm:$0xff] }
  0xf9   : > { %1368 = vmatpush.bf16.msra.mxu1 %v3485_v21 }
  0xfa   : > { %1382 = vmatpush.bf16.msra.mxu2 %v3493_v22 }
  0xfb   : > { %1396 = vmatpush.bf16.msra.mxu3 %v3501_v23 }
  0xfc   : > { %1355 = vmatpush.bf16.msra.mxu0 %v3476_v24 }
  0xfd   : > { %1369 = vmatpush.bf16.msra.mxu1 %v3484_v25  ;;  %v1434_v25 = vld [vmem:[#allocation8 + $0x8] sm:$0xff] }
  0xfe   : > { %1383 = vmatpush.bf16.msra.mxu2 %v3492_v26 }
  0xff   : > { %1397 = vmatpush.bf16.msra.mxu3 %v3500_v27 }
 0x100   : > { %1356 = vmatpush.bf16.msra.mxu0 %v3475_v28 }
 0x101   : > { %1370 = vmatpush.bf16.msra.mxu1 %v3483_v29 }
 0x102   : > { %1384 = vmatpush.bf16.msra.mxu2 %v3491_v30 }
 0x103   : > { %1398 = vmatpush.bf16.msra.mxu3 %v3499_v39  ;;  %1357 = vmatmul.bf16.vlgmr.msra.gmra.mxu0 %v2980_v42 }
 0x104   : > { %1405 = vmatpush.bf16.msrb.mxu0 %v3514_v31  ;;  %1371 = vmatmul.bf16.vlgmr.msra.gmra.mxu1 %v2984_v43 }
 0x105   : > { %1419 = vmatpush.bf16.msrb.mxu1 %v3522_v36  ;;  %1385 = vmatmul.bf16.vlgmr.msra.gmra.mxu2 %v2988_v44 }
 0x106   : > { %1399 = vmatmul.bf16.vlgmr.msra.gmra.mxu3 %v2992_v46 }
 0x108   : > { %1406 = vmatpush.bf16.msrb.mxu0 %v3513_v45 }
 0x109   : > { %1420 = vmatpush.bf16.msrb.mxu1 %v3521_v47 }
 0x10c   : > { %1407 = vmatpush.bf16.msrb.mxu0 %v3512_v48 }
 0x10d   : > { %1421 = vmatpush.bf16.msrb.mxu1 %v3520_v49 }
 0x110   : > { %1408 = vmatpush.bf16.msrb.mxu0 %v3511_v50 }
 0x111   : > { %1422 = vmatpush.bf16.msrb.mxu1 %v3519_v51 }
 0x114   : > { %1409 = vmatpush.bf16.msrb.mxu0 %v3510_v52 }
 0x115   : > { %1423 = vmatpush.bf16.msrb.mxu1 %v3518_v53 }
 0x118   : > { %1410 = vmatpush.bf16.msrb.mxu0 %v3509_v54 }
 0x119   : > { %1424 = vmatpush.bf16.msrb.mxu1 %v3517_v55 }
 0x11c   : > { %1411 = vmatpush.bf16.msrb.mxu0 %v3508_v56 }
 0x11d   : > { %1425 = vmatpush.bf16.msrb.mxu1 %v3516_v57 }
 0x120   : > { %1412 = vmatpush.bf16.msrb.mxu0 %v3507_v58 }
 0x121   : > { %1426 = vmatpush.bf16.msrb.mxu1 %v3515_v61 }
 0x123   : > { %1413 = vmatmul.bf16.vlgmr.msrb.gmra.mxu0 %v2996_v0 }
 0x124   : > { %1427 = vmatmul.bf16.vlgmr.msrb.gmra.mxu1 %v3000_v1 }
 0x180   : > { %v1358_v2 = vpop.f32.mrf.mxu0 }
 0x181   : > { %v1372_v3 = vpop.f32.mrf.mxu1 }
 0x182   : > { %v1373_v5 = vadd.f32 %v1372_v3, %v1358_v2 }
 0x188   : > { %v1386_v4 = vpop.f32.mrf.mxu2  ;;  %v1360_v6 = vpop.f32.mrf.mxu0 }
 0x189   : > { %v1374_v7 = vpop.f32.mrf.mxu1  ;;  %v1400_v8 = vpop.f32.mrf.mxu3  ;;  %v1387_v9 = vadd.f32 %v1386_v4, %v1373_v5 }
 0x18a   : > { %v1375_v11 = vadd.f32 %v1374_v7, %v1360_v6 }
 0x18b   : > { %v1401_v10 = vadd.f32 %v1400_v8, %v1387_v9 }
 0x190   : > { %v1388_v12 = vpop.f32.mrf.mxu2 }
 0x191   : > { %v1389_v17 = vadd.f32 %v1388_v12, %v1375_v11  ;;  %v1402_v19 = vpop.f32.mrf.mxu3 }
 0x193   : > { %v1403_v21 = vadd.f32 %v1402_v19, %v1389_v17 }
 0x1a0   : > { %v1414_v13 = vpop.f32.mrf.mxu0 }
 0x1a1   : > { %v1415_v14 = vadd.f32 %v1414_v13, %v1401_v10  ;;  %v1428_v15 = vpop.f32.mrf.mxu1 }
 0x1a3   : > { %v1429_v18 = vadd.f32 %v1428_v15, %v1415_v14 }
 0x1a5   : > { %v1435_v20 = vadd.f32 %v1433_v16, %v1429_v18 }
 0x1a7   : > { %1437 = vst [vmem:[#allocation2] sm:$0xff] %v1435_v20 }
 0x1a8   : > { %v1416_v22 = vpop.f32.mrf.mxu0 }
 0x1a9   : > { %v1417_v23 = vadd.f32 %v1416_v22, %v1403_v21  ;;  %v1430_v24 = vpop.f32.mrf.mxu1 }
 0x1ab   : > { %v1431_v26 = vadd.f32 %v1430_v24, %v1417_v23 }
 0x1ad   : > { %v1436_v27 = vadd.f32 %v1434_v25, %v1431_v26 }
 0x1af   : > { %1438 = vst [vmem:[#allocation2 + $0x8] sm:$0xff] %v1436_v27 }
 0x1b0 PF: > { %v4623_v28 = vld [vmem:[#allocation2] sm:$0xff]  ;;  %v4208_v30 = vmov 128.0   ;;  %v3279_v45 = vld [vmem:[%s4573_s26 + $0xa8] sm:$0xf]  ;;  %v3281_v49 = vld [vmem:[%s4573_s26 + $0xb4] sm:$0xf0] }
 0x1b1   : > { %1491 = vadd.xlane.f32.xlu0 %v4623_v28  ;;  %3725 = vrcp.f32 %v4208_v30  ;;  %v3545_v46 = vld [vmem:[%s4573_s26 + $0xb0] sm:$0xf0]  ;;  %v3544_v47 = vld [vmem:[%s4573_s26 + $0xac] sm:$0xf]  ;;  %v3287_v50 = vld [vmem:[%s4573_s26 + $0xb0] sm:$0xf] }
 0x1b2   : > { %v3280_v48 = vor.u32 %v3545_v46, %v3279_v45  ;;  %v3546_v51 = vld [vmem:[%s4573_s26 + $0xb8] sm:$0xf0]  ;;  %v3284_v52 = vor.u32 %v3544_v47, %v3281_v49  ;;  %v3267_v54 = vld [vmem:[%s4573_s26 + $0x90] sm:$0xf]  ;;  %v3541_v56 = vld [vmem:[%s4573_s26 + $0x94] sm:$0xf] }
 0x1b3   : > { %v3288_v53 = vor.u32 %v3546_v51, %v3287_v50  ;;  %v3542_v55 = vld [vmem:[%s4573_s26 + $0x98] sm:$0xf0]  ;;  %v3269_v58 = vld [vmem:[%s4573_s26 + $0x9c] sm:$0xf0]  ;;  %v3275_v59 = vld [vmem:[%s4573_s26 + $0x98] sm:$0xf] }
 0x1b4   : > { %1717 = vmatpush.bf16.msra.mxu0 %v3280_v48  ;;  %1731 = vmatpush.bf16.msra.mxu1 %v3284_v52  ;;  %v3268_v57 = vor.u32 %v3542_v55, %v3267_v54  ;;  %v3543_v60 = vld [vmem:[%s4573_s26 + $0xa0] sm:$0xf0]  ;;  %v3272_v61 = vor.u32 %v3541_v56, %v3269_v58  ;;  %v3255_v63 = vld [vmem:[%s4573_s26 + $0x78] sm:$0xf]  ;;  %v3538_v1 = vld [vmem:[%s4573_s26 + $0x7c] sm:$0xf] }
 0x1b5   : > { %1745 = vmatpush.bf16.msra.mxu2 %v3288_v53  ;;  %v3276_v62 = vor.u32 %v3543_v60, %v3275_v59  ;;  %v3539_v0 = vld [vmem:[%s4573_s26 + $0x80] sm:$0xf0]  ;;  %v3257_v3 = vld [vmem:[%s4573_s26 + $0x84] sm:$0xf0]  ;;  %v3263_v4 = vld [vmem:[%s4573_s26 + $0x80] sm:$0xf] }
 0x1b6   : > { %v4626_v29 = vld [vmem:[#allocation2 + $0x8] sm:$0xff]  ;;  %v3256_v2 = vor.u32 %v3539_v0, %v3255_v63  ;;  %v3540_v5 = vld [vmem:[%s4573_s26 + $0x88] sm:$0xf0]  ;;  %v3260_v6 = vor.u32 %v3538_v1, %v3257_v3  ;;  %v3243_v8 = vld [vmem:[%s4573_s26 + $0x60] sm:$0xf]  ;;  %s4976_s23 = scalar_lea.vmem [#allocation9], %s4564_s3 }
 0x1b7   : > { %v3726_v31 = vpop.eup %3725  ;;  %v3264_v7 = vor.u32 %v3540_v5, %v3263_v4  ;;  %v3536_v9 = vld [vmem:[%s4573_s26 + $0x68] sm:$0xf0]  ;;  %v3535_v10 = vld [vmem:[%s4573_s26 + $0x64] sm:$0xf]  ;;  %v3245_v12 = vld [vmem:[%s4573_s26 + $0x6c] sm:$0xf0] }
 0x1b8   : > { %v1496_v32 = vmul.f32 128.0, %v3726_v31  ;;  %vm1500_vm0 = vweird.f32 %v3726_v31  ;;  %1718 = vmatpush.bf16.msra.mxu0 %v3268_v57  ;;  %1732 = vmatpush.bf16.msra.mxu1 %v3272_v61  ;;  %v3244_v11 = vor.u32 %v3536_v9, %v3243_v8  ;;  %v3251_v13 = vld [vmem:[%s4573_s26 + $0x68] sm:$0xf]  ;;  %v3537_v14 = vld [vmem:[%s4573_s26 + $0x70] sm:$0xf0]  ;;  %v3248_v15 = vor.u32 %v3535_v10, %v3245_v12  ;;  %s4211_s6 = smov 64  }
 0x1b9   : > { %1493 = vadd.xlane.f32.xlu0 %v4626_v29  ;;  %1746 = vmatpush.bf16.msra.mxu2 %v3276_v62  ;;  %v3252_v16 = vor.u32 %v3537_v14, %v3251_v13  ;;  %v3231_v17 = vld [vmem:[%s4573_s26 + $0x48] sm:$0xf]  ;;  %v3533_v18 = vld [vmem:[%s4573_s26 + $0x50] sm:$0xf0]  ;;  %v3532_v19 = vld [vmem:[%s4573_s26 + $0x4c] sm:$0xf] }
 0x1ba   : > { %v1497_v33 = vsub.f32 1.0, %v1496_v32  ;;  %v3232_v20 = vor.u32 %v3533_v18, %v3231_v17  ;;  %v3233_v21 = vld [vmem:[%s4573_s26 + $0x54] sm:$0xf0]  ;;  %v3239_v22 = vld [vmem:[%s4573_s26 + $0x50] sm:$0xf]  ;;  %vm1844_vm7 = vcmask 261120  }
 0x1bb   : > { %v3534_v23 = vld [vmem:[%s4573_s26 + $0x58] sm:$0xf0]  ;;  %v3236_v24 = vor.u32 %v3532_v19, %v3233_v21  ;;  %v3219_v26 = vld [vmem:[%s4573_s26 + $0x30] sm:$0xf]  ;;  %v3529_v30 = vld [vmem:[%s4573_s26 + $0x34] sm:$0xf] }
 0x1bc   : > { %v1498_v34 = vmul.f32 %v3726_v31, %v1497_v33  ;;  %1719 = vmatpush.bf16.msra.mxu0 %v3256_v2  ;;  %1733 = vmatpush.bf16.msra.mxu1 %v3260_v6  ;;  %v3240_v25 = vor.u32 %v3534_v23, %v3239_v22  ;;  %v3530_v27 = vld [vmem:[%s4573_s26 + $0x38] sm:$0xf0]  ;;  %v3221_v32 = vld [vmem:[%s4573_s26 + $0x3c] sm:$0xf0]  ;;  %v3227_v33 = vld [vmem:[%s4573_s26 + $0x38] sm:$0xf] }
 0x1bd   : > { %1747 = vmatpush.bf16.msra.mxu2 %v3264_v7  ;;  %v3215_v45 = vld [vmem:[%s4573_s26 + $0x20] sm:$0xf]  ;;  %v3528_v46 = vld [vmem:[%s4573_s26 + $0x28] sm:$0xf0]  ;;  %v3523_v51 = vld [vmem:[%s4573_s26 + $0x4] sm:$0xf] }
 0x1be   : > { %v1499_v35 = vadd.f32 %v3726_v31, %v1498_v34  ;;  %v3531_v34 = vld [vmem:[%s4573_s26 + $0x40] sm:$0xf0]  ;;  %v3216_v48 = vor.u32 %v3528_v46, %v3215_v45  ;;  %v3195_v49 = vld [vmem:[%s4573_s26] sm:$0xf]  ;;  %v3524_v50 = vld [vmem:[%s4573_s26 + $0x8] sm:$0xf0] }
 0x1bf   : > { %v3196_v53 = vor.u32 %v3524_v50, %v3195_v49  ;;  %v3197_v54 = vld [vmem:[%s4573_s26 + $0xc] sm:$0xf0]  ;;  %v3203_v55 = vld [vmem:[%s4573_s26 + $0x8] sm:$0xf]  ;;  %v3525_v56 = vld [vmem:[%s4573_s26 + $0x10] sm:$0xf0] }
 0x1c0   : > { %v4629_v36 = vsel %vm1500_vm0, %v3726_v31, %v1499_v35  ;;  %1720 = vmatpush.bf16.msra.mxu0 %v3244_v11  ;;  %1734 = vmatpush.bf16.msra.mxu1 %v3248_v15  ;;  %v3220_v31 = vor.u32 %v3530_v27, %v3219_v26  ;;  %v3224_v35 = vor.u32 %v3529_v30, %v3221_v32  ;;  %v3719_v13 = vld [vmem:[%s913_s30] ss:$0 sm:$0xff]  ;;  %vm1862_vm11 = vcmask 130048   ;;  %s4212_s8 = smov 32   ;;  %s4979_s0 = scalar_lea.vmem [#allocation17], %s4564_s3 }
 0x1c1   : > { %1748 = vmatpush.bf16.msra.mxu2 %v3252_v16  ;;  %v3200_v58 = vor.u32 %v3523_v51, %v3197_v54  ;;  %v3204_v59 = vor.u32 %v3525_v56, %v3203_v55  ;;  %v3720_v18 = vld [vmem:[%s4976_s23] ss:$0 sm:$0xff]  ;;  %s4981_s29 = sld [smem:[#allocation31_spill]] }
 0x1c4   : > { %1721 = vmatpush.bf16.msra.mxu0 %v3232_v20  ;;  %1735 = vmatpush.bf16.msra.mxu1 %v3236_v24 }
 0x1c5   : > { %1749 = vmatpush.bf16.msra.mxu2 %v3240_v25 }
 0x1c7   : > { %p3461_p8 = scmp.ne.s32.totalorder %s4981_s29, 1 }
 0x1c8   : > { %1722 = vmatpush.bf16.msra.mxu0 %v3220_v31  ;;  %1736 = vmatpush.bf16.msra.mxu1 %v3224_v35  ;;  %s4983_s12 = sld [smem:[#allocation47_spill]] (!%p3461_p8) }
 0x224   : > { %v1492_v37 = vpop.xlane.xlu0 %1491 }
 0x225   : > { %v1502_v38 = vmul.f32 %v4629_v36, %v1492_v37  ;;  %v3228_v37 = vor.u32 %v3531_v34, %v3227_v33 }
 0x227   : > { %v4633_v39 = vsub.f32 %v4623_v28, %v1502_v38  ;;  %1750 = vmatpush.bf16.msra.mxu2 %v3228_v37  ;;  %v3207_v38 = vld [vmem:[%s4573_s26 + $0x18] sm:$0xf] }
 0x229   : > { %v1506_v40 = vmul.f32 %v4633_v39, %v4633_v39 }
 0x22b   : > { %1508 = vadd.xlane.f32.xlu1 %v1506_v40  ;;  %v3527_v40 = vld [vmem:[%s4573_s26 + $0x20] sm:$0xf0]  ;;  %1751 = vmatpush.bf16.msra.mxu2 %v3216_v48 }
 0x22c   : > { %v1494_v41 = vpop.xlane.xlu0 %1493 }
 0x22d   : > { %v1503_v42 = vmul.f32 %v4629_v36, %v1494_v41  ;;  %v3526_v41 = vld [vmem:[%s4573_s26 + $0x1c] sm:$0xf] }
 0x22f   : > { %v4639_v43 = vsub.f32 %v4626_v29, %v1503_v42  ;;  %v3208_v42 = vor.u32 %v3527_v40, %v3207_v38  ;;  %1752 = vmatpush.bf16.msra.mxu2 %v3204_v59 }
 0x231   : > { %v1507_v44 = vmul.f32 %v4639_v43, %v4639_v43  ;;  %1723 = vmatpush.bf16.msra.mxu0 %v3208_v42 }
 0x233   : > { %1510 = vadd.xlane.f32.xlu1 %v1507_v44  ;;  %v3209_v44 = vld [vmem:[%s4573_s26 + $0x24] sm:$0xf0] }
 0x234   : > { %v3212_v47 = vor.u32 %v3526_v41, %v3209_v44 }
 0x235   : > { %1724 = vmatpush.bf16.msra.mxu0 %v3196_v53 }
 0x236   : > { %1737 = vmatpush.bf16.msra.mxu1 %v3212_v47 }
 0x23a   : > { %1738 = vmatpush.bf16.msra.mxu1 %v3200_v58 }
 0x29e   : > { %v1509_v52 = vpop.xlane.xlu1 %1508 }
 0x29f   : > { %v1512_v57 = vmul.f32 %v1509_v52, %v4629_v36 }
 0x2a1   : > { %v1514_v60 = vadd.f32 1e-06, %v1512_v57 }
 0x2a3   : > { %3727 = vrsqrt.f32 %v1514_v60  ;;  %vm1522_vm2 = vweird.f32 %v1514_v60 }
 0x2a6   : > { %v1511_v61 = vpop.xlane.xlu1 %1510 }
 0x2a7   : > { %v1513_v62 = vmul.f32 %v1511_v61, %v4629_v36 }
 0x2a9   : > { %v3728_v63 = vpop.eup %3727  ;;  %v1515_v0 = vadd.f32 1e-06, %v1513_v62 }
 0x2aa   : > { %v1517_v1 = vmul.f32 %v3728_v63, %v1514_v60  ;;  %vm1523_vm1 = vweird.f32 %v3728_v63 }
 0x2ab   : > { %3729 = vrsqrt.f32 %v1515_v0  ;;  %vm1524_vm3 = vmor %vm1522_vm2, %vm1523_vm1  ;;  %vm1532_vm5 = vweird.f32 %v1515_v0 }
 0x2ac   : > { %v1518_v2 = vmul.f32 %v3728_v63, %v1517_v1 }
 0x2ae   : > { %v1519_v3 = vmul.f32 0.5, %v1518_v2  ;;  %v1441_v2 = vlaneseq }
 0x2b0   : > { %v1520_v4 = vsub.f32 1.5, %v1519_v3  ;;  %v1442_v3 = vshrl.u32 %v1441_v2, 7 }
 0x2b1   : > { %v3730_v5 = vpop.eup %3729 }
 0x2b2   : > { %v1521_v6 = vmul.f32 %v3728_v63, %v1520_v4  ;;  %v1527_v7 = vmul.f32 %v3730_v5, %v1515_v0  ;;  %vm1533_vm4 = vweird.f32 %v3730_v5  ;;  %v1445_v4 = vand.u32 127, %v1441_v2 }
 0x2b3   : > { %vm1534_vm6 = vmor %vm1532_vm5, %vm1533_vm4 }
 0x2b4   : > { %v1528_v8 = vmul.f32 %v3730_v5, %v1527_v7  ;;  %v1525_v9 = vsel %vm1524_vm3, %v3728_v63, %v1521_v6  ;;  %v1474_v6 = vand.u32 1, %v1445_v4  ;;  %vm1484_vm9 = vcmp.lt.s32.totalorder %v1445_v4, 10 }
 0x2b5   : > { %v1536_v12 = vmul.f32 %v1525_v9, %v4633_v39  ;;  %v1581_v39 = vld [vmem:[%s4575_s18] sm:$0x7]  ;;  %v1443_v7 = vadd.s32 8, %v1442_v3  ;;  %v4209_v9 = vmov -1e+09   ;;  %s4210_s18 = smov 96  }
 0x2b6   : > { %v1529_v10 = vmul.f32 0.5, %v1528_v8  ;;  %v1584_v23 = vperm.slane %v1581_v39, 1  ;;  %v1583_v26 = vperm.slane %v1581_v39, 0  ;;  %v1585_v47 = vperm.slane %v1581_v39, 2 }
 0x2b7   : > { %v1541_v17 = vmul.f32 %v3719_v13, %v1536_v12  ;;  %v1457_v8 = vand.u32 1, %v1443_v7 }
 0x2b8   : > { %v1530_v11 = vsub.f32 1.5, %v1529_v10 }
 0x2b9   : > { %v1546_v20 = vadd.f32 %v3720_v18, %v1541_v17  ;;  %vm1483_vm12 = vcmp.eq.s32.totalorder %v1457_v8, %v1474_v6 }
 0x2ba   : > { %v1531_v14 = vmul.f32 %v3730_v5, %v1530_v11  ;;  %vm1486_vm13 = vmand %vm1483_vm12, %vm1484_vm9 }
 0x2bc   : > { %v1535_v15 = vsel %vm1534_vm6, %v3730_v5, %v1531_v14  ;;  %v1450_v5 = vand.u32 1, %v1442_v3  ;;  %v4714_v14 = vsel %vm1486_vm13, 0.0, %v4209_v9 }
 0x2bd   : > { %v1537_v16 = vmul.f32 %v1535_v15, %v4639_v43 }
 0x2be   : > { %vm1482_vm8 = vcmp.eq.s32.totalorder %v1450_v5, %v1474_v6 }
 0x2bf   : > { %v1542_v19 = vmul.f32 %v3719_v13, %v1537_v16  ;;  %vm1485_vm10 = vmand %vm1482_vm8, %vm1484_vm9 }
 0x2c0   : > { %v4710_v10 = vsel %vm1485_vm10, 0.0, %v4209_v9 }
 0x2c1   : > { %v1547_v21 = vadd.f32 %v3720_v18, %v1542_v19 }
 0x2c3   : > { %v1548_v22 = vpack.c.bf16 %v1547_v21, %v1546_v20 }
 0x2c5   : > { %1725 = vmatmul.bf16.vlgmr.msra.gmra.mxu0 %v1548_v22  ;;  %1739 = vmatmul.bf16.vlgmr.msra.gmra.mxu1 %v1548_v22 }
 0x2c6   : > { %1753 = vmatmul.bf16.vlgmr.msra.gmra.mxu2 %v1548_v22 }
 0x342   : > { %v1726_v24 = vpop.f32.mrf.mxu0  ;;  %v1740_v25 = vpop.f32.mrf.mxu1 }
 0x343   : > { %v1741_v27 = vadd.f32 %v1740_v25, %v1584_v23  ;;  %v1727_v30 = vadd.f32 %v1726_v24, %v1583_v26 }
 0x345   : > { %1763 = vxpose.xlu2.b32.start [1/2] (short) %v1741_v27, 128  ;;  %v1759_v32 = vpack.c.bf16 %v1741_v27, %v1727_v30 }
 0x347   : > { %v1829_v37 = vunpack.c.l.b16 %v1759_v32 }
 0x349   : > { %v1754_v44 = vpop.f32.mrf.mxu2 }
 0x34a   : > { %v1728_v31 = vpop.f32.mrf.mxu0  ;;  %v1742_v43 = vpop.f32.mrf.mxu1  ;;  %v1755_v50 = vadd.f32 %v1754_v44, %v1585_v47 }
 0x34b   : > { %v1729_v33 = vadd.f32 %v1728_v31, %v1583_v26  ;;  %v1743_v34 = vadd.f32 %v1742_v43, %v1584_v23 }
 0x34c   : > { %v1760_v58 = vpack.c.bf16 %v1755_v50, %v1755_v50 }
 0x34d   : > { %v1761_v35 = vpack.c.bf16 %v1743_v34, %v1729_v33  ;;  %1764 = vxpose.xlu2.b32.end [2/2] (short) %v1743_v34, 128 }
 0x34e   : > { %v1888_v63 = vunpack.c.l.b16 %v1760_v58 }
 0x34f   : > { %v1830_v38 = vunpack.c.l.b16 %v1761_v35 }
 0x351   : > { %v4703_v40 = vpack.c.b16 %v1830_v38, %v1829_v37  ;;  %v1756_v46 = vpop.f32.mrf.mxu2 }
 0x352   : > { %v1757_v48 = vadd.f32 %v1756_v46, %v1585_v47 }
 0x354   : > { %v1762_v54 = vpack.c.bf16 %v1757_v48, %v1757_v48 }
 0x356   : > { %v1889_v61 = vunpack.c.l.b16 %v1762_v54 }
 0x358   : > { %v4705_v1 = vpack.c.b16 %v1889_v61, %v1888_v63  ;;  %v3547_v61 = vld [vmem:[%s4582_s21] sm:$0xff] }
 0x3de   : > { %v1779_v41 = vpop.trf.xlu2 }
 0x3df   : > { %v1795_v55 = vpack.c.bf16 %v1779_v41, %v1779_v41 }
 0x3e1   : > { %v1836_v62 = vunpack.c.l.b16 %v1795_v55 }
 0x3e6   : > { %v1780_v42 = vpop.trf.xlu2 }
 0x3e7   : > { %v1796_v52 = vpack.c.bf16 %v1780_v42, %v1780_v42 }
 0x3e9   : > { %v1837_v59 = vunpack.c.l.b16 %v1796_v52 }
 0x3eb   : > { %v1840_v0 = vpack.c.b16 %v1837_v59, %v1836_v62 }
 0x3ee   : > { %v1781_v45 = vpop.trf.xlu2 }
 0x3ef   : > { %v1797_v49 = vpack.c.bf16 %v1781_v45, %v1781_v45 }
 0x3f1   : > { %v1838_v56 = vunpack.c.l.b16 %v1797_v49 }
 0x3f6   : > { %v1782_v51 = vpop.trf.xlu2 }
 0x3f7   : > { %v1798_v53 = vpack.c.bf16 %v1782_v51, %v1782_v51 }
 0x3f9   : > { %v1839_v57 = vunpack.c.l.b16 %v1798_v53 }
 0x3fb   : > { %v1841_v60 = vpack.c.b16 %v1839_v57, %v1838_v56 }
 0x3fd   : > { %1854 = vmatpush.bf16.msra.mxu3 %v1841_v60  ;;  %v3548_v60 = vld [vmem:[%s4582_s21 + $0x8] sm:$0xff] }
 0x3fe   : > { %v1783_v18 = vpop.trf.xlu2  ;;  %2035 = vmatpush.bf16.msrb.mxu2 %v3548_v60 }
 0x3ff   : > { %v1799_v24 = vpack.c.bf16 %v1783_v18, %v1783_v18 }
 0x401   : > { %1855 = vmatpush.bf16.msra.mxu3 %v1840_v0  ;;  %v1916_v43 = vunpack.c.l.b16 %v1799_v24 }
 0x402   : > { %2036 = vmatpush.bf16.msrb.mxu2 %v3547_v61 }
 0x404   : > { %3289 = vmatmul.msk.bf16.vlgmr.msra.gmra.mxu3 %vm1844_vm7, %v4703_v40 }
 0x405   : > { %1902 = vmatpush.bf16.msrb.mxu3 %v4705_v1 }
 0x406   : > { %v1784_v19 = vpop.trf.xlu2 }
 0x407   : > { %v1800_v25 = vpack.c.bf16 %v1784_v19, %v1784_v19 }
 0x409   : > { %v1917_v32 = vunpack.c.l.b16 %v1800_v25 }
 0x40b   : > { %v1920_v42 = vpack.c.b16 %v1917_v32, %v1916_v43 }
 0x40e   : > { %v1785_v20 = vpop.trf.xlu2 }
 0x40f   : > { %v1801_v39 = vpack.c.bf16 %v1785_v20, %v1785_v20 }
 0x411   : > { %v1918_v27 = vunpack.c.l.b16 %v1801_v39 }
 0x416   : > { %v1786_v26 = vpop.trf.xlu2 }
 0x417   : > { %v1802_v30 = vpack.c.bf16 %v1786_v26, %v1786_v26 }
 0x419   : > { %v1919_v33 = vunpack.c.l.b16 %v1802_v30 }
 0x41b   : > { %v1921_v35 = vpack.c.b16 %v1919_v33, %v1918_v27 }
 0x41d   : > { %1933 = vmatpush.bf16.msra.mxu3 %v1921_v35 }
 0x41e   : > { %v1787_v44 = vpop.trf.xlu2 }
 0x41f   : > { %v1803_v45 = vpack.c.bf16 %v1787_v44, %v1787_v44 }
 0x421   : > { %1934 = vmatpush.bf16.msra.mxu3 %v1920_v42  ;;  %v2049_v49 = vunpack.c.l.b16 %v1803_v45 }
 0x426   : > { %v1788_v48 = vpop.trf.xlu2 }
 0x427   : > { %v1804_v50 = vpack.c.bf16 %v1788_v48, %v1788_v48 }
 0x429   : > { %v2050_v51 = vunpack.c.l.b16 %v1804_v50 }
 0x42b   : > { %v2053_v52 = vpack.c.b16 %v2050_v51, %v2049_v49 }
 0x42e   : > { %v1789_v53 = vpop.trf.xlu2 }
 0x42f   : > { %v1805_v54 = vpack.c.bf16 %v1789_v53, %v1789_v53 }
 0x431   : > { %v2051_v56 = vunpack.c.l.b16 %v1805_v54 }
 0x436   : > { %v1790_v55 = vpop.trf.xlu2 }
 0x437   : > { %v1806_v57 = vpack.c.bf16 %v1790_v55, %v1790_v55 }
 0x439   : > { %v2052_v58 = vunpack.c.l.b16 %v1806_v57 }
 0x43b   : > { %v2054_v59 = vpack.c.b16 %v2052_v58, %v2051_v56 }
 0x43e   : > { %v1791_v62 = vpop.trf.xlu2 }
 0x43f   : > { %v1807_v3 = vpack.c.bf16 %v1791_v62, %v1791_v62 }
 0x441   : > { %v2155_v8 = vunpack.c.l.b16 %v1807_v3 }
 0x446   : > { %v1792_v63 = vpop.trf.xlu2 }
 0x447   : > { %v1808_v4 = vpack.c.bf16 %v1792_v63, %v1792_v63 }
 0x449   : > { %v2156_v9 = vunpack.c.l.b16 %v1808_v4 }
 0x44e   : > { %v1793_v0 = vpop.trf.xlu2 }
 0x44f   : > { %v1809_v2 = vpack.c.bf16 %v1793_v0, %v1793_v0 }
 0x451   : > { %v2157_v6 = vunpack.c.l.b16 %v1809_v2 }
 0x456   : > { %v1794_v5 = vpop.trf.xlu2 }
 0x457   : > { %v1810_v7 = vpack.c.bf16 %v1794_v5, %v1794_v5 }
 0x487   : > { %v1857_v11 = vpop.f32.mrf.mxu3 }
 0x488   : > { %v1858_v12 = vadd.f32 %v1857_v11, %v4710_v10  ;;  %v2158_v11 = vunpack.c.l.b16 %v1810_v7 }
 0x48a   : > { %v1863_v13 = vsel %vm1862_vm11, %v1858_v12, -inf }
 0x48b   : > { %1864 = vmax.xlane.f32.xlu0 %v1863_v13  ;;  %v2159_v13 = vpack.c.b16 %v2156_v9, %v2155_v8 }
 0x48f   : > { %v1859_v15 = vpop.f32.mrf.mxu3 }
 0x490   : > { %v1860_v16 = vadd.f32 %v1859_v15, %v4714_v14 }
 0x492   : > { %v1866_v17 = vsel %vm1862_vm11, %v1860_v16, -inf }
 0x493   : > { %1867 = vmax.xlane.f32.xlu1 %v1866_v17 }
 0x4ac   : > { %1910 = vrot.lane.b32.xlu1 %v4703_v40, %s4210_s18 }
 0x4b4   : > { %2043 = vrot.lane.b32.xlu1 %v4703_v40, %s4211_s6 }
 0x4fe   : > { %v1865_v21 = vpop.xlane.xlu0 %1864 }
 0x4ff   : > { %v1869_v22 = vsub.f32 %v1858_v12, %v1865_v21  ;;  %v2160_v12 = vpack.c.b16 %v2158_v11, %v2157_v6 }
 0x501   : > { %v1871_v23 = vmul.f32 1.442695, %v1869_v22  ;;  %2172 = vmatpush.bf16.msra.mxu2 %v2160_v12 }
 0x503   : > { %3731 = vpow2.f32 %v1871_v23 }
 0x505   : > { %2173 = vmatpush.bf16.msra.mxu2 %v2159_v13 }
 0x506   : > { %v1868_v31 = vpop.xlane.xlu1 %1867 }
 0x507   : > { %v1870_v34 = vsub.f32 %v1860_v16, %v1868_v31 }
 0x509   : > { %v3732_v37 = vpop.eup %3731  ;;  %v1873_v38 = vmul.f32 1.442695, %v1870_v34 }
 0x50a   : > { %v1875_v41 = vsel %vm1862_vm11, %v3732_v37, 0.0 }
 0x50b   : > { %3733 = vpow2.f32 %v1873_v38  ;;  %1876 = vadd.xlane.f32.xlu2 %v1875_v41 }
 0x511   : > { %v3734_v46 = vpop.eup %3733 }
 0x512   : > { %v1878_v47 = vsel %vm1862_vm11, %v3734_v46, 0.0 }
 0x513   : > { %1879 = vadd.xlane.f32.xlu0 %v1878_v47 }
 0x51e   : > { %v1911_v21 = vpop.permute.xlu1 %1910 }
 0x526   : > { %v2044_v22 = vpop.permute.xlu1 %2043 }
 0x527   : > { %2149 = vrot.lane.b32.xlu0 %v4703_v40, %s4212_s8 }
 0x57e   : > { %v1877_v40 = vpop.xlane.xlu2 %1876 }
 0x57f   : > { %3735 = vrcp.f32 %v1877_v40 }
 0x585   : > { %v3736_v16 = vpop.eup %3735 }
 0x586   : > { %v1880_v15 = vpop.xlane.xlu0 %1879  ;;  %v1883_v18 = vmul.f32 %v3736_v16, %v3732_v37 }
 0x587   : > { %3737 = vrcp.f32 %v1880_v15 }
 0x58d   : > { %v3738_v17 = vpop.eup %3737 }
 0x58e   : > { %v1884_v19 = vmul.f32 %v3738_v17, %v3734_v46 }
 0x590   : > { %v1885_v20 = vpack.c.bf16 %v1884_v19, %v1883_v18 }
 0x592   : > { %3290 = vmatmul.msk.bf16.vlgmr.msrb.gmra.mxu3 %vm1862_vm11, %v1885_v20 }
 0x593   : > { %2066 = vmatpush.bf16.msrb.mxu3 %v2054_v59 }
 0x597   : > { %2067 = vmatpush.bf16.msrb.mxu3 %v2053_v52 }
 0x599   : > { %v2150_v43 = vpop.permute.xlu0 %2149 }
 0x5a2   : > { %3291 = vmatmul.msk.bf16.vlgmr.msra.gmra.mxu3 %vm1844_vm7, %v1911_v21 }
 0x5b2   : > { %3311 = vmatmul.msk.bf16.vlgmr.msrb.gmra.mxu3 %vm1844_vm7, %v2044_v22 }
 0x615   : > { %v1904_v39 = vpop.f32.mrf.mxu3 }
 0x61d   : > { %v1906_v23 = vpop.f32.mrf.mxu3 }
 0x61e   : > { %v1909_v24 = vpack.c.bf16 %v1906_v23, %v1904_v39 }
 0x620   : > { %3310 = vmatmul.msk.bf16.vlgmr.msrb.gmra.mxu2 %vm1844_vm7, %v1909_v24 }
 0x625   : > { %v1936_v25 = vpop.f32.mrf.mxu3 }
 0x626   : > { %v1937_v26 = vadd.f32 %v1936_v25, %v4710_v10  ;;  %v3550_v25 = vld [vmem:[%s4582_s21 + $0x18] sm:$0xff] }
 0x627   : > { %2006 = vmatpush.bf16.msrb.mxu1 %v3550_v25  ;;  %v3567_v25 = vld [vmem:[%s4591_s14 + $0x64] sm:$0xf] }
 0x628   : > { %v1941_v27 = vsel %vm1862_vm11, %v1937_v26, -inf }
 0x629   : > { %1942 = vmax.xlane.f32.xlu0 %v1941_v27 }
 0x62d   : > { %v1938_v30 = vpop.f32.mrf.mxu3 }
 0x62e   : > { %v1939_v31 = vadd.f32 %v1938_v30, %v4714_v14 }
 0x630   : > { %3322 = vmatmul.msk.bf16.vlgmr.msra.gmra.mxu2 %vm1844_vm7, %v2150_v43  ;;  %v1944_v32 = vsel %vm1862_vm11, %v1939_v31, -inf }
 0x631   : > { %1945 = vmax.xlane.f32.xlu1 %v1944_v32 }
 0x635   : > { %v2069_v33 = vpop.f32.mrf.mxu3 }
 0x636   : > { %v2070_v34 = vadd.f32 %v2069_v33, %v4710_v10 }
 0x638   : > { %v2074_v35 = vsel %vm1862_vm11, %v2070_v34, -inf }
 0x639   : > { %2075 = vmax.xlane.f32.xlu0 %v2074_v35 }
 0x63d   : > { %v2071_v37 = vpop.f32.mrf.mxu3 }
 0x63e   : > { %v2072_v38 = vadd.f32 %v2071_v37, %v4714_v14 }
 0x640   : > { %v2077_v41 = vsel %vm1862_vm11, %v2072_v38, -inf }
 0x641   : > { %2078 = vmax.xlane.f32.xlu1 %v2077_v41 }
 0x69c   : > { %v1943_v42 = vpop.xlane.xlu0 %1942 }
 0x69d   : > { %v1947_v44 = vsub.f32 %v1937_v26, %v1943_v42  ;;  %v3549_v26 = vld [vmem:[%s4582_s21 + $0x10] sm:$0xff] }
 0x69e   : > { %2007 = vmatpush.bf16.msrb.mxu1 %v3549_v26 }
 0x69f   : > { %v1949_v45 = vmul.f32 1.442695, %v1947_v44 }
 0x6a1   : > { %3739 = vpow2.f32 %v1949_v45 }
 0x6a3   : > { %v4741_v46 = vpop.f32.mrf.mxu2 }
 0x6a4   : > { %v1946_v47 = vpop.xlane.xlu1 %1945 }
 0x6a5   : > { %v1948_v48 = vsub.f32 %v1939_v31, %v1946_v47 }
 0x6a7   : > { %v3740_v49 = vpop.eup %3739  ;;  %v1951_v50 = vmul.f32 1.442695, %v1948_v48 }
 0x6a8   : > { %v1953_v51 = vsel %vm1862_vm11, %v3740_v49, 0.0 }
 0x6a9   : > { %3741 = vpow2.f32 %v1951_v50  ;;  %1954 = vadd.xlane.f32.xlu0 %v1953_v51  ;;  %v3554_v50 = vld [vmem:[%s4582_s21 + $0x38] sm:$0xff]  ;;  %v3553_v51 = vld [vmem:[%s4582_s21 + $0x30] sm:$0xff] }
 0x6ab   : > { %v4744_v52 = vpop.f32.mrf.mxu2 }
 0x6ac   : > { %v2076_v58 = vpop.xlane.xlu0 %2075 }
 0x6ad   : > { %v2080_v59 = vsub.f32 %v2070_v34, %v2076_v58 }
 0x6af   : > { %v3742_v53 = vpop.eup %3741  ;;  %v2082_v60 = vmul.f32 1.442695, %v2080_v59 }
 0x6b0   : > { %v1956_v54 = vsel %vm1862_vm11, %v3742_v53, 0.0 }
 0x6b1   : > { %1957 = vadd.xlane.f32.xlu1 %v1956_v54  ;;  %3743 = vpow2.f32 %v2082_v60  ;;  %v3551_v54 = vld [vmem:[%s4582_s21 + $0x20] sm:$0xff] }
 0x6b3   : > { %v2175_v55 = vpop.f32.mrf.mxu2 }
 0x6b4   : > { %v2176_v56 = vadd.f32 %v2175_v55, %v4710_v10  ;;  %v2079_v61 = vpop.xlane.xlu1 %2078 }
 0x6b5   : > { %v2081_v62 = vsub.f32 %v2072_v38, %v2079_v61 }
 0x6b6   : > { %v2180_v57 = vsel %vm1862_vm11, %v2176_v56, -inf }
 0x6b7   : > { %2181 = vmax.xlane.f32.xlu0 %v2180_v57  ;;  %v2084_v0 = vmul.f32 1.442695, %v2081_v62  ;;  %v4754_v10 = vpop.eup %3743 }
 0x6b8   : > { %v2086_v4 = vsel %vm1862_vm11, %v4754_v10, 0.0 }
 0x6b9   : > { %3745 = vpow2.f32 %v2084_v0 }
 0x6bb   : > { %v2177_v63 = vpop.f32.mrf.mxu2 }
 0x6bc   : > { %v2178_v2 = vadd.f32 %v2177_v63, %v4714_v14 }
 0x6be   : > { %v2183_v3 = vsel %vm1862_vm11, %v2178_v2, -inf }
 0x6bf   : > { %v3746_v5 = vpop.eup %3745 }
 0x6c0   : > { %v2089_v6 = vsel %vm1862_vm11, %v3746_v5, 0.0 }
 0x6ca   : > { %2203 = vrot.lane.b32.xlu1 %v4705_v1, %s4212_s8 }
 0x6cb   : > { %1964 = vrot.lane.b32.xlu0 %v4705_v1, %s4210_s18 }
 0x6f4   : > { %2184 = vmax.xlane.f32.xlu1 %v2183_v3 }
 0x6f5   : > { %2087 = vadd.xlane.f32.xlu0 %v2086_v4 }
 0x6fc   : > { %2090 = vadd.xlane.f32.xlu1 %v2089_v6 }
 0x71c   : > { %v1955_v7 = vpop.xlane.xlu0 %1954 }
 0x724   : > { %v1958_v12 = vpop.xlane.xlu1 %1957 }
 0x72a   : > { %v2182_v8 = vpop.xlane.xlu0 %2181 }
 0x72b   : > { %v2186_v9 = vsub.f32 %v2176_v56, %v2182_v8 }
 0x72d   : > { %v2188_v11 = vmul.f32 1.442695, %v2186_v9 }
 0x72f   : > { %3747 = vpow2.f32 %v2188_v11 }
 0x730   : > { %3749 = vrcp.f32 %v1958_v12 }
 0x731   : > { %3751 = vrcp.f32 %v1955_v7 }
 0x735   : > { %v3748_v14 = vpop.eup %3747 }
 0x736   : > { %v2192_v13 = vsel %vm1862_vm11, %v3748_v14, 0.0  ;;  %v3750_v40 = vpop.eup %3749 }
 0x737   : > { %2193 = vadd.xlane.f32.xlu1 %v2192_v13  ;;  %v3752_v15 = vpop.eup %3751  ;;  %v1962_v16 = vmul.f32 %v3750_v40, %v3742_v53  ;;  %v3552_v53 = vld [vmem:[%s4582_s21 + $0x28] sm:$0xff]  ;;  %s4977_s21 = scalar_lea.vmem [#allocation15], %s4564_s3 }
 0x738   : > { %v1961_v18 = vmul.f32 %v3752_v15, %v3740_v49  ;;  %2139 = vmatpush.bf16.msra.mxu1 %v3552_v53  ;;  %v3721_v4 = vld [vmem:[%s4977_s21] ss:$0 sm:$0xff]  ;;  %v3351_v53 = vld [vmem:[%s4591_s14 + $0x20] sm:$0xf] }
 0x73a   : > { %v1963_v20 = vpack.c.bf16 %v1962_v16, %v1961_v18  ;;  %v3391_v18 = vld [vmem:[%s4591_s14 + $0x70] sm:$0xf] }
 0x73c   : > { %v2204_v17 = vpop.permute.xlu1 %2203  ;;  %2140 = vmatpush.bf16.msra.mxu1 %v3551_v54  ;;  %v3560_v54 = vld [vmem:[%s4591_s14 + $0x24] sm:$0xf0] }
 0x73d   : > { %2216 = vmatpush.bf16.msra.mxu3 %v2204_v17  ;;  %v1965_v19 = vpop.permute.xlu0 %1964 }
 0x73e   : > { %1977 = vmatpush.bf16.msrb.mxu0 %v1965_v19  ;;  %v3570_v19 = vld [vmem:[%s4591_s14 + $0x74] sm:$0xf0] }
 0x741   : > { %3292 = vmatmul.msk.bf16.vlgmr.msrb.gmra.mxu0 %vm1862_vm11, %v1963_v20  ;;  %v3569_v20 = vld [vmem:[%s4591_s14 + $0x74] sm:$0xf] }
 0x767   : > { %v2185_v21 = vpop.xlane.xlu1 %2184 }
 0x768   : > { %v2187_v22 = vsub.f32 %v2178_v2, %v2185_v21  ;;  %v2088_v41 = vpop.xlane.xlu0 %2087  ;;  %v3392_v21 = vor.u32 %v3570_v19, %v3391_v18 }
 0x76a   : > { %v2190_v39 = vmul.f32 1.442695, %v2187_v22  ;;  %v3393_v22 = vld [vmem:[%s4591_s14 + $0x78] sm:$0xf0] }
 0x76c   : > { %3753 = vpow2.f32 %v2190_v39  ;;  %v3396_v39 = vor.u32 %v3569_v20, %v3393_v22 }
 0x76e   : > { %2432 = vmatpush.bf16.msrb.mxu2 %v3396_v39 }
 0x76f   : > { %v2091_v43 = vpop.xlane.xlu1 %2090 }
 0x772   : > { %v3754_v23 = vpop.eup %3753 }
 0x773   : > { %v2195_v24 = vsel %vm1862_vm11, %v3754_v23, 0.0 }
 0x774   : > { %2196 = vadd.xlane.f32.xlu1 %v2195_v24  ;;  %v3568_v24 = vld [vmem:[%s4591_s14 + $0x64] sm:$0xf0] }
 0x78d   : > { %2097 = vrot.lane.b32.xlu1 %v4705_v1, %s4211_s6 }
 0x7aa   : > { %v2194_v32 = vpop.xlane.xlu1 %2193 }
 0x7ab   : > { %3755 = vrcp.f32 %v2194_v32  ;;  %v3565_v32 = vld [vmem:[%s4591_s14 + $0x54] sm:$0xf] }
 0x7b1   : > { %v3756_v34 = vpop.eup %3755 }
 0x7b2   : > { %v2200_v37 = vmul.f32 %v3756_v34, %v3748_v14  ;;  %v3377_v34 = vld [vmem:[%s4591_s14 + $0x58] sm:$0xf0] }
 0x7be   : > { %v1979_v27 = vpop.f32.mrf.mxu0 }
 0x7c6   : > { %v1981_v30 = vpop.f32.mrf.mxu0 }
 0x7c7   : > { %v1984_v31 = vpack.c.bf16 %v1981_v30, %v1979_v27  ;;  %v3385_v27 = vld [vmem:[%s4591_s14 + $0x68] sm:$0xf0] }
 0x7c8   : > { %v3388_v30 = vor.u32 %v3567_v25, %v3385_v27  ;;  %v3722_v25 = vld [vmem:[%s916_s24] ss:$0 sm:$0xff]  ;;  %s4982_s24 = sld [smem:[#allocation46_spill]] (!%p3461_p8) }
 0x7c9   : > { %3301 = vmatmul.msk.bf16.vlgmr.msrb.gmra.mxu1 %vm1844_vm7, %v1984_v31  ;;  %v3375_v31 = vld [vmem:[%s4591_s14 + $0x50] sm:$0xf] }
 0x7ca   : > { %2418 = vmatpush.bf16.msrb.mxu1 %v3392_v21  ;;  %2433 = vmatpush.bf16.msrb.mxu2 %v3388_v30 }
 0x7e7   : > { %v2197_v33 = vpop.xlane.xlu1 %2196 }
 0x7e8   : > { %3757 = vrcp.f32 %v2197_v33 }
 0x7e9   : > { %3759 = vrcp.f32 %v2091_v43  ;;  %v3566_v43 = vld [vmem:[%s4591_s14 + $0x54] sm:$0xf0] }
 0x7ea   : > { %3761 = vrcp.f32 %v2088_v41  ;;  %v3376_v33 = vor.u32 %v3566_v43, %v3375_v31  ;;  %v3723_v43 = vld [vmem:[%s4979_s0] ss:$0 sm:$0xff] }
 0x7ee   : > { %v3758_v35 = vpop.eup %3757 }
 0x7ef   : > { %v2201_v38 = vmul.f32 %v3758_v35, %v3754_v23  ;;  %v3760_v42 = vpop.eup %3759  ;;  %v3383_v23 = vld [vmem:[%s4591_s14 + $0x60] sm:$0xf]  ;;  %v3380_v35 = vor.u32 %v3565_v32, %v3377_v34 }
 0x7f0   : > { %v3762_v44 = vpop.eup %3761  ;;  %v2095_v45 = vmul.f32 %v3760_v42, %v3746_v5  ;;  %v3384_v26 = vor.u32 %v3568_v24, %v3383_v23  ;;  %v3369_v42 = vld [vmem:[%s4591_s14 + $0x48] sm:$0xf0] }
 0x7f1   : > { %v2202_v1 = vpack.c.bf16 %v2201_v38, %v2200_v37  ;;  %v2094_v47 = vmul.f32 %v3762_v44, %v4754_v10  ;;  %2434 = vmatpush.bf16.msrb.mxu2 %v3380_v35  ;;  %v3367_v37 = vld [vmem:[%s4591_s14 + $0x40] sm:$0xf]  ;;  %v3564_v38 = vld [vmem:[%s4591_s14 + $0x44] sm:$0xf0]  ;;  %v3578_v35 = vld [vmem:[%s4619_s20 + $0x38] sm:$0xff] }
 0x7f2   : > { %2419 = vmatpush.bf16.msrb.mxu1 %v3384_v26  ;;  %v3368_v41 = vor.u32 %v3564_v38, %v3367_v37  ;;  %2616 = vmatpush.bf16.msrb.mxu3 %v3578_v35  ;;  %v3577_v37 = vld [vmem:[%s4619_s20 + $0x30] sm:$0xff]  ;;  %v3576_v38 = vld [vmem:[%s4619_s20 + $0x28] sm:$0xff] }
 0x7f3   : > { %3323 = vmatmul.msk.bf16.vlgmr.msra.gmra.mxu3 %vm1862_vm11, %v2202_v1  ;;  %v2096_v49 = vpack.c.bf16 %v2095_v45, %v2094_v47  ;;  %v3563_v1 = vld [vmem:[%s4591_s14 + $0x44] sm:$0xf]  ;;  %v3359_v45 = vld [vmem:[%s4591_s14 + $0x30] sm:$0xf]  ;;  %v3562_v47 = vld [vmem:[%s4591_s14 + $0x34] sm:$0xf0] }
 0x7f4   : > { %v3372_v44 = vor.u32 %v3563_v1, %v3369_v42  ;;  %v3585_v1 = vld [vmem:[%s4619_s20 + $0x70] sm:$0xff]  ;;  %v3584_v42 = vld [vmem:[%s4619_s20 + $0x68] sm:$0xff] }
 0x7f6   : > { %2420 = vmatpush.bf16.msrb.mxu1 %v3376_v33  ;;  %2435 = vmatpush.bf16.msrb.mxu2 %v3372_v44  ;;  %v3574_v44 = vld [vmem:[%s4619_s20 + $0x18] sm:$0xff] }
 0x7f7   : > { %2617 = vmatpush.bf16.msrb.mxu3 %v3577_v37 }
 0x7fa   : > { %2421 = vmatpush.bf16.msrb.mxu1 %v3368_v41  ;;  %v3575_v41 = vld [vmem:[%s4619_s20 + $0x20] sm:$0xff] }
 0x7fb   : > { %2618 = vmatpush.bf16.msrb.mxu3 %v3576_v38 }
 0x7ff   : > { %v2098_v48 = vpop.permute.xlu1 %2097  ;;  %2619 = vmatpush.bf16.msrb.mxu3 %v3575_v41 }
 0x800   : > { %2110 = vmatpush.bf16.msra.mxu0 %v2098_v48  ;;  %v3561_v48 = vld [vmem:[%s4591_s14 + $0x34] sm:$0xf] }
 0x803   : > { %3312 = vmatmul.msk.bf16.vlgmr.msra.gmra.mxu0 %vm1862_vm11, %v2096_v49  ;;  %v3360_v49 = vor.u32 %v3562_v47, %v3359_v45  ;;  %2620 = vmatpush.bf16.msrb.mxu3 %v3574_v44  ;;  %v3583_v45 = vld [vmem:[%s4619_s20 + $0x60] sm:$0xff]  ;;  %v3573_v47 = vld [vmem:[%s4619_s20 + $0x10] sm:$0xff] }
 0x804   : > { %2245 = vmatpush.bf16.msrb.mxu0 %v3554_v50  ;;  %v3361_v50 = vld [vmem:[%s4591_s14 + $0x38] sm:$0xf0] }
 0x805   : > { %2422 = vmatpush.bf16.msrb.mxu1 %v3360_v49  ;;  %v3572_v49 = vld [vmem:[%s4619_s20 + $0x8] sm:$0xff] }
 0x807   : > { %2621 = vmatpush.bf16.msrb.mxu3 %v3573_v47 }
 0x808   : > { %2246 = vmatpush.bf16.msrb.mxu0 %v3553_v51  ;;  %v3364_v51 = vor.u32 %v3561_v48, %v3361_v50  ;;  %v3582_v48 = vld [vmem:[%s4619_s20 + $0x58] sm:$0xff]  ;;  %v2332_v50 = vld [vmem:[%s4617_s16] sm:$0x3] }
 0x80a   : > { %2436 = vmatpush.bf16.msrb.mxu2 %v3364_v51  ;;  %v3581_v51 = vld [vmem:[%s4619_s20 + $0x50] sm:$0xff] }
 0x80b   : > { %2622 = vmatpush.bf16.msrb.mxu3 %v3572_v49 }
 0x846   : > { %v2009_v61 = vpop.f32.mrf.mxu1 }
 0x847   : > { %v2039_v63 = vadd.f32 %v4741_v46, %v2009_v61  ;;  %v3557_v61 = vld [vmem:[%s4591_s14 + $0x14] sm:$0xf] }
 0x84e   : > { %v2011_v62 = vpop.f32.mrf.mxu1 }
 0x84f   : > { %v2041_v6 = vadd.f32 %v4744_v52, %v2011_v62 }
 0x876   : > { %v2218_v55 = vpop.f32.mrf.mxu3 }
 0x87e   : > { %v2220_v56 = vpop.f32.mrf.mxu3 }
 0x87f   : > { %v2223_v57 = vpack.c.bf16 %v2220_v56, %v2218_v55  ;;  %v3559_v55 = vld [vmem:[%s4591_s14 + $0x24] sm:$0xf]  ;;  %v3352_v56 = vor.u32 %v3560_v54, %v3351_v53  ;;  %v2334_v54 = vperm.slane %v2332_v50, 0 }
 0x880   : > { %v2112_v58 = vpop.f32.mrf.mxu0  ;;  %v3571_v53 = vld [vmem:[%s4619_s20] sm:$0xff] }
 0x881   : > { %3332 = vmatmul.msk.bf16.vlgmr.msrb.gmra.mxu0 %vm1844_vm7, %v2223_v57  ;;  %v3353_v57 = vld [vmem:[%s4591_s14 + $0x28] sm:$0xf0]  ;;  %2423 = vmatpush.bf16.msrb.mxu1 %v3352_v56 }
 0x882   : > { %2623 = vmatpush.bf16.msrb.mxu3 %v3571_v53 }
 0x888   : > { %v2114_v59 = vpop.f32.mrf.mxu0 }
 0x889   : > { %v2117_v60 = vpack.c.bf16 %v2114_v59, %v2112_v58  ;;  %v3356_v58 = vor.u32 %v3559_v55, %v3353_v57  ;;  %v3343_v59 = vld [vmem:[%s4591_s14 + $0x10] sm:$0xf]  ;;  %v3580_v55 = vld [vmem:[%s4619_s20 + $0x48] sm:$0xff] }
 0x88b   : > { %3321 = vmatmul.msk.bf16.vlgmr.msra.gmra.mxu1 %vm1844_vm7, %v2117_v60  ;;  %2437 = vmatpush.bf16.msrb.mxu2 %v3356_v58  ;;  %v3558_v60 = vld [vmem:[%s4591_s14 + $0x14] sm:$0xf0]  ;;  %v3579_v58 = vld [vmem:[%s4619_s20 + $0x40] sm:$0xff] }
 0x88c   : > { %v3344_v62 = vor.u32 %v3558_v60, %v3343_v59  ;;  %v2335_v60 = vperm.slane %v2332_v50, 1 }
 0x88e   : > { %2424 = vmatpush.bf16.msrb.mxu1 %v3344_v62 }
 0x8fe   : > { %v2248_v0 = vpop.f32.mrf.mxu0 }
 0x906   : > { %v2250_v11 = vpop.f32.mrf.mxu0 }
 0x908   : > { %v2142_v2 = vpop.f32.mrf.mxu1 }
 0x909   : > { %v2147_v10 = vadd.f32 %v2142_v2, %v2039_v63  ;;  %v3345_v63 = vld [vmem:[%s4591_s14 + $0x18] sm:$0xf0]  ;;  %v3556_v2 = vld [vmem:[%s4591_s14 + $0x4] sm:$0xf0] }
 0x90b   : > { %v2253_v3 = vadd.f32 %v2248_v0, %v2147_v10  ;;  %v3335_v0 = vld [vmem:[%s4591_s14] sm:$0xf] }
 0x90d   : > { %v2255_v5 = vadd.f32 %v2253_v3, %v4623_v28  ;;  %v3348_v3 = vor.u32 %v3557_v61, %v3345_v63 }
 0x90f   : > { %v4782_v7 = vadd.f32 %v3721_v4, %v2255_v5  ;;  %v3337_v5 = vld [vmem:[%s4591_s14 + $0x8] sm:$0xf0]  ;;  %2438 = vmatpush.bf16.msrb.mxu2 %v3348_v3 }
 0x910   : > { %v2144_v8 = vpop.f32.mrf.mxu1 }
 0x911   : > { %v2148_v9 = vadd.f32 %v2144_v8, %v2041_v6  ;;  %2265 = vadd.xlane.f32.xlu0 %v4782_v7  ;;  %v3336_v8 = vor.u32 %v3556_v2, %v3335_v0 }
 0x913   : > { %v2254_v46 = vadd.f32 %v2250_v11, %v2148_v9  ;;  %2425 = vmatpush.bf16.msrb.mxu1 %v3336_v8 }
 0x915   : > { %v2256_v12 = vadd.f32 %v2254_v46, %v4626_v29 }
 0x917   : > { %v4786_v14 = vadd.f32 %v3721_v4, %v2256_v12  ;;  %v3555_v4 = vld [vmem:[%s4591_s14 + $0x4] sm:$0xf] }
 0x918   : > { %v3340_v9 = vor.u32 %v3555_v4, %v3337_v5 }
 0x919   : > { %2267 = vadd.xlane.f32.xlu1 %v4786_v14 }
 0x91a   : > { %2439 = vmatpush.bf16.msrb.mxu2 %v3340_v9 }
 0x984   : > { %v2266_v28 = vpop.xlane.xlu0 %2265 }
 0x985   : > { %v2269_v52 = vmul.f32 %v2266_v28, %v4629_v36 }
 0x987   : > { %v4791_v13 = vsub.f32 %v4782_v7, %v2269_v52 }
 0x989   : > { %v2273_v40 = vmul.f32 %v4791_v13, %v4791_v13 }
 0x98b   : > { %2275 = vadd.xlane.f32.xlu0 %v2273_v40 }
 0x98c   : > { %v2268_v15 = vpop.xlane.xlu1 %2267 }
 0x98d   : > { %v2270_v29 = vmul.f32 %v2268_v15, %v4629_v36 }
 0x98f   : > { %v4797_v16 = vsub.f32 %v4786_v14, %v2270_v29 }
 0x991   : > { %v2274_v17 = vmul.f32 %v4797_v16, %v4797_v16 }
 0x993   : > { %2277 = vadd.xlane.f32.xlu0 %v2274_v17 }
 0x9fe   : > { %v2276_v10 = vpop.xlane.xlu0 %2275 }
 0x9ff   : > { %v2279_v6 = vmul.f32 %v2276_v10, %v4629_v36 }
 0xa01   : > { %v2281_v11 = vadd.f32 1e-06, %v2279_v6 }
 0xa03   : > { %3763 = vrsqrt.f32 %v2281_v11  ;;  %vm2289_vm15 = vweird.f32 %v2281_v11 }
 0xa06   : > { %v2278_v46 = vpop.xlane.xlu0 %2277 }
 0xa07   : > { %v2280_v12 = vmul.f32 %v2278_v46, %v4629_v36 }
 0xa09   : > { %v3764_v28 = vpop.eup %3763  ;;  %v2282_v52 = vadd.f32 1e-06, %v2280_v12 }
 0xa0a   : > { %v2284_v40 = vmul.f32 %v3764_v28, %v2281_v11  ;;  %vm2290_vm14 = vweird.f32 %v3764_v28 }
 0xa0b   : > { %3765 = vrsqrt.f32 %v2282_v52  ;;  %vm2291_vm0 = vmor %vm2289_vm15, %vm2290_vm14  ;;  %vm2299_vm2 = vweird.f32 %v2282_v52 }
 0xa0c   : > { %v2285_v15 = vmul.f32 %v3764_v28, %v2284_v40 }
 0xa0e   : > { %v2286_v29 = vmul.f32 0.5, %v2285_v15 }
 0xa10   : > { %v2287_v17 = vsub.f32 1.5, %v2286_v29 }
 0xa11   : > { %v3766_v18 = vpop.eup %3765 }
 0xa12   : > { %v2288_v19 = vmul.f32 %v3764_v28, %v2287_v17  ;;  %v2294_v20 = vmul.f32 %v3766_v18, %v2282_v52  ;;  %vm2300_vm1 = vweird.f32 %v3766_v18 }
 0xa13   : > { %vm2301_vm3 = vmor %vm2299_vm2, %vm2300_vm1 }
 0xa14   : > { %v2295_v21 = vmul.f32 %v3766_v18, %v2294_v20  ;;  %v2292_v22 = vsel %vm2291_vm0, %v3764_v28, %v2288_v19 }
 0xa15   : > { %v2303_v24 = vmul.f32 %v2292_v22, %v4791_v13 }
 0xa16   : > { %v2296_v39 = vmul.f32 0.5, %v2295_v21 }
 0xa17   : > { %v2308_v31 = vmul.f32 %v3722_v25, %v2303_v24 }
 0xa18   : > { %v2297_v23 = vsub.f32 1.5, %v2296_v39 }
 0xa19   : > { %v2313_v13 = vadd.f32 %v3723_v43, %v2308_v31 }
 0xa1a   : > { %v2298_v26 = vmul.f32 %v3766_v18, %v2297_v23 }
 0xa1c   : > { %v2302_v27 = vsel %vm2301_vm3, %v3766_v18, %v2298_v26 }
 0xa1d   : > { %v2304_v30 = vmul.f32 %v2302_v27, %v4797_v16  ;;  %v3586_v16 = vld [vmem:[%s4619_s20 + $0x78] sm:$0xff] }
 0xa1e   : > { %2630 = vmatpush.bf16.msra.mxu0 %v3586_v16 }
 0xa1f   : > { %v2309_v32 = vmul.f32 %v3722_v25, %v2304_v30 }
 0xa21   : > { %v2314_v33 = vadd.f32 %v3723_v43, %v2309_v32 }
 0xa22   : > { %2631 = vmatpush.bf16.msra.mxu0 %v3585_v1  ;;  %v3724_v1 = vld [vmem:[%s923_s9] ss:$0 sm:$0xff] }
 0xa23   : > { %v2315_v34 = vpack.c.bf16 %v2314_v33, %v2313_v13 }
 0xa25   : > { %2426 = vmatmul.bf16.vlgmr.msrb.gmra.mxu1 %v2315_v34  ;;  %2440 = vmatmul.bf16.vlgmr.msrb.gmra.mxu2 %v2315_v34 }
 0xa26   : > { %2632 = vmatpush.bf16.msra.mxu0 %v3584_v42 }
 0xa2a   : > { %2633 = vmatpush.bf16.msra.mxu0 %v3583_v45 }
 0xa2e   : > { %2634 = vmatpush.bf16.msra.mxu0 %v3582_v48 }
 0xa32   : > { %2635 = vmatpush.bf16.msra.mxu0 %v3581_v51 }
 0xa36   : > { %2636 = vmatpush.bf16.msra.mxu0 %v3580_v55 }
 0xa3a   : > { %2637 = vmatpush.bf16.msra.mxu0 %v3579_v58 }
 0xaa2   : > { %v2427_v56 = vpop.f32.mrf.mxu1 }
 0xaa3   : > { %v2428_v57 = vadd.f32 %v2427_v56, %v2334_v54 }
 0xaa5   : > { %v2450_v59 = vmul.f32 0.044715, %v2428_v57  ;;  %v2446_v24 = vmul.f32 0.5, %v2428_v57 }
 0xaa7   : > { %v2454_v61 = vmul.f32 %v2450_v59, %v2428_v57 }
 0xaa8   : > { %v2441_v62 = vpop.f32.mrf.mxu2 }
 0xaa9   : > { %v2458_v63 = vmul.f32 %v2454_v61, %v2428_v57  ;;  %v2442_v0 = vadd.f32 %v2441_v62, %v2335_v60 }
 0xaaa   : > { %v2429_v2 = vpop.f32.mrf.mxu1 }
 0xaab   : > { %v2462_v10 = vadd.f32 %v2458_v63, %v2428_v57  ;;  %v2451_v3 = vmul.f32 0.044715, %v2442_v0  ;;  %v2430_v4 = vadd.f32 %v2429_v2, %v2334_v54  ;;  %v2447_v33 = vmul.f32 0.5, %v2442_v0 }
 0xaad   : > { %v2455_v5 = vmul.f32 %v2451_v3, %v2442_v0  ;;  %v2452_v6 = vmul.f32 0.044715, %v2430_v4  ;;  %v2466_v8 = vmul.f32 0.7978846, %v2462_v10  ;;  %v2448_v25 = vmul.f32 0.5, %v2430_v4 }
 0xaaf   : > { %v2459_v9 = vmul.f32 %v2455_v5, %v2442_v0  ;;  %v2456_v11 = vmul.f32 %v2452_v6, %v2430_v4  ;;  %3767 = vtanh.f32 %v2466_v8 }
 0xab0   : > { %v2443_v46 = vpop.f32.mrf.mxu2 }
 0xab1   : > { %v2463_v12 = vadd.f32 %v2459_v9, %v2442_v0  ;;  %v2460_v28 = vmul.f32 %v2456_v11, %v2430_v4  ;;  %v2444_v52 = vadd.f32 %v2443_v46, %v2335_v60 }
 0xab3   : > { %v2464_v40 = vadd.f32 %v2460_v28, %v2430_v4  ;;  %v2453_v15 = vmul.f32 0.044715, %v2444_v52  ;;  %v2467_v29 = vmul.f32 0.7978846, %v2463_v12  ;;  %v2449_v34 = vmul.f32 0.5, %v2444_v52 }
 0xab5   : > { %v2468_v17 = vmul.f32 0.7978846, %v2464_v40  ;;  %v2457_v18 = vmul.f32 %v2453_v15, %v2444_v52  ;;  %v3768_v20 = vpop.eup %3767 }
 0xab6   : > { %v2474_v39 = vadd.f32 1.0, %v3768_v20 }
 0xab7   : > { %v2461_v19 = vmul.f32 %v2457_v18, %v2444_v52  ;;  %3769 = vtanh.f32 %v2468_v17 }
 0xab8   : > { %3771 = vtanh.f32 %v2467_v29  ;;  %v2478_v30 = vmul.f32 %v2474_v39, %v2446_v24 }
 0xab9   : > { %v2465_v21 = vadd.f32 %v2461_v19, %v2444_v52 }
 0xabb   : > { %v2469_v22 = vmul.f32 0.7978846, %v2465_v21 }
 0xabd   : > { %v3770_v23 = vpop.eup %3769  ;;  %3773 = vtanh.f32 %v2469_v22 }
 0xabe   : > { %v2476_v26 = vadd.f32 1.0, %v3770_v23  ;;  %v3772_v27 = vpop.eup %3771 }
 0xabf   : > { %v2475_v32 = vadd.f32 1.0, %v3772_v27 }
 0xac0   : > { %v2480_v31 = vmul.f32 %v2476_v26, %v2448_v25 }
 0xac1   : > { %v2479_v37 = vmul.f32 %v2475_v32, %v2447_v33 }
 0xac2   : > { %v2482_v43 = vpack.c.bf16 %v2480_v31, %v2478_v30 }
 0xac3   : > { %v3774_v13 = vpop.eup %3773 }
 0xac4   : > { %2624 = vmatmul.bf16.vlgmr.msrb.gmra.mxu3 %v2482_v43  ;;  %v2477_v35 = vadd.f32 1.0, %v3774_v13 }
 0xac6   : > { %v2481_v16 = vmul.f32 %v2477_v35, %v2449_v34 }
 0xac8   : > { %v2483_v38 = vpack.c.bf16 %v2481_v16, %v2479_v37 }
 0xaca   : > { %2638 = vmatmul.bf16.vlgmr.msra.gmra.mxu0 %v2483_v38 }
 0xb47   : > { %v2625_v41 = vpop.f32.mrf.mxu3  ;;  %v2639_v42 = vpop.f32.mrf.mxu0 }
 0xb48   : > { %v2626_v44 = vadd.f32 %v3724_v1, %v2625_v41 }
 0xb4a   : > { %v2640_v45 = vadd.f32 %v2639_v42, %v2626_v44 }
 0xb4c   : > { %v2644_v47 = vadd.f32 %v2640_v45, %v4782_v7 }
 0xb4e   : > { %2646 = vst [vmem:[#allocation2] sm:$0xff] %v2644_v47 }
 0xb4f   : > { %v2627_v48 = vpop.f32.mrf.mxu3  ;;  %v2641_v50 = vpop.f32.mrf.mxu0 }
 0xb50   : > { %v2628_v49 = vadd.f32 %v3724_v1, %v2627_v48 }
 0xb52   : > { %v2642_v51 = vadd.f32 %v2641_v50, %v2628_v49  ;;  %2651 = sbr.rel (%p3461_p8) target bundleno = 3173 (0xc65), region = 140 }
 0xb54   : > { %v2645_v53 = vadd.f32 %v2642_v51, %v4786_v14 }
 0xb56   : > { %2647 = vst [vmem:[#allocation2 + $0x8] sm:$0xff] %v2645_v53 }
 0xb57   : > { %vm2654_vm4 = vcmask 1041408   ;;  %v3775_v3 = vld [vmem:[%s4982_s24] ss:$0 sm:$0xff] }
 0xb58   : > { %v2655_v54 = vsel %vm2654_vm4, %v2644_v47, 0.0 }
 0xb59   : > { %2656 = vadd.xlane.f32.xlu0 %v2655_v54 }
 0xbcc   : > { %v2657_v55 = vpop.xlane.xlu0 %2656 }
 0xbcd   : > { %v2658_v56 = vmul.f32 %v2657_v55, %v4629_v36 }
 0xbcf   : > { %v2659_v57 = vsub.f32 %v2644_v47, %v2658_v56 }
 0xbd1   : > { %v2660_v58 = vmul.f32 %v2659_v57, %v2659_v57 }
 0xbd3   : > { %v2661_v7 = vsel %vm2654_vm4, %v2660_v58, 0.0 }
 0xbd4   : > { %2662 = vadd.xlane.f32.xlu0 %v2661_v7 }
 0xc47   : > { %v2663_v59 = vpop.xlane.xlu0 %2662 }
 0xc48   : > { %v2664_v60 = vmul.f32 %v2663_v59, %v4629_v36  ;;  %v3776_v36 = vld [vmem:[%s4983_s12] ss:$0 sm:$0xff] }
 0xc4a   : > { %v2665_v61 = vadd.f32 1e-06, %v2664_v60 }
 0xc4c   : > { %3777 = vrsqrt.f32 %v2665_v61  ;;  %vm2672_vm6 = vweird.f32 %v2665_v61 }
 0xc52   : > { %v3778_v14 = vpop.eup %3777 }
 0xc53   : > { %v2667_v62 = vmul.f32 %v3778_v14, %v2665_v61  ;;  %vm2673_vm5 = vweird.f32 %v3778_v14 }
 0xc54   : > { %vm2674_vm7 = vmor %vm2672_vm6, %vm2673_vm5 }
 0xc55   : > { %v2668_v63 = vmul.f32 %v3778_v14, %v2667_v62 }
 0xc57   : > { %v2669_v0 = vmul.f32 0.5, %v2668_v63 }
 0xc59   : > { %v2670_v2 = vsub.f32 1.5, %v2669_v0 }
 0xc5b   : > { %v2671_v10 = vmul.f32 %v3778_v14, %v2670_v2 }
 0xc5d   : > { %v2675_v4 = vsel %vm2674_vm7, %v3778_v14, %v2671_v10 }
 0xc5e   : > { %v2676_v5 = vmul.f32 %v2675_v4, %v2659_v57 }
 0xc60   : > { %v2680_v6 = vmul.f32 %v3775_v3, %v2676_v5 }
 0xc62   : > { %v2684_v8 = vadd.f32 %v3776_v36, %v2680_v6 }
 0xc64   : > { %2685 = vst [vmem:[#allocation21] sm:$0x3] %v2684_v8 }
 0xc65 PF: > { %s4984_s19 = sld [smem:[#allocation31_spill]]  ;;  %s4213_s9 = smov [#allocation21]  }
 0xc66   : > { %s2692_s25 = sshll.u32 %s4213_s9, 4  ;;  %s4985_s26 = sld [smem:[#allocation48_spill]]  ;;  %s2693_s25 = int_to_ptr.vmem [resolvable:$true] %s2692_s25 }
 0xc6b   : > { %p3667_p9 = scmp.eq.s32.totalorder %s4984_s19, 1 }
 0xc6c   : > { %s2694_s27 = sshll.u32 %s4985_s26, 4  ;;  %s2695_s27 = int_to_ptr.hbm [resolvable:$true] %s2694_s27 }
 0xc6d   : > { %3622 = dma.vmem_to_hbm [thread:$0]  (%p3667_p9), %s2693_s25, 32, %s2695_s27, [#allocation5]  }
 0xc6e   : > { %4178 = dma.done.wait (%p3667_p9), [#allocation5], 32  }
 0xc6f   : > { %4180 = vsyncadd (%p3667_p9), [#allocation5], 4294967264 }
 0xc70 PF: > { %s4986_s27 = sld [smem:[#allocation32_spill]] }
 0xc71   : > { %s4987_s24 = sld [smem:[#allocation29_spill]] }
 0xc72   : > { %s4988_s25 = sld [smem:[#allocation30_spill]] }
 0xc73   : > { %s4989_s26 = sld [smem:[#allocation33_spill]] }
 0xc76   : > { %p39_p10 = scmp.ge.s32.totalorder %s4986_s27, 4  }
 0xc78   :  { %41 = sbr.rel (!%p39_p10) target bundleno = 26 (0x1a), region = 241 }
 0xc7d   :  { %2708 = vsyncpa [#allocation4], 1 }
 0xc7e   :  { %2710 = vsyncpa [#allocation4 + $0x1], 1 }
 0xc7f   :  { %2711 = vsyncpa [#allocation7], 1 }
 0xc80   :  { %2712 = vsyncpa [#allocation10], 1 }
 0xc81   :  { %2714 = vsyncpa [#allocation10 + $0x1], 1 }
 0xc82   :  { %2715 = vsyncpa [#allocation13], 1 }
 0xc83   :  { %2717 = vsyncpa [#allocation13 + $0x1], 1 }
 0xc84   :  { %2718 = vsyncpa [#allocation16], 1 }
 0xc85   :  { %2720 = vsyncpa [#allocation16 + $0x1], 1 }
 0xc86   :  { %2721 = vsyncpa [#allocation19], 1 }
 0xc87   :  { %2723 = vsyncpa [#allocation19 + $0x1], 1 }
 0xc88   :  { %2724 = vsyncpa [#allocation5], 1 }
 0xc89   :  { %2726 = vsyncpa [#allocation5 + $0x1], 1 }

</bundles_post_ra>
